<compile_context>
chip_gen: v5e
topology: v5e:2x2
jax: 0.10.0
libtpu: 0.0.40
codegen_flags: <defaults>
</compile_context>

<pallas_src>
import functools

import jax
import jax.numpy as jnp
import numpy as np
from jax import lax
from jax.experimental import pallas as pl
from jax.experimental.pallas import tpu as pltpu


def _block_kernel(x_ref, wtap_ref, s1_ref, b1_ref, wg_ref, s2_ref, b2_ref,
                  o_ref, xp_ref, *, stride, cin):
    """Fused depthwise3x3 -> BN -> ReLU -> pointwise1x1 -> BN -> ReLU.

    x_ref   : (1, H, W*Cin)      one image, lane-dense (W*Cin in lanes)
    wtap_ref: (9, W*Cin)         depthwise weights, tap (dh,dw) tiled over W
    s1/b1   : (1, W*Cin)         folded BN1 scale / bias, tiled over W
    wg_ref  : (g*Cin, go*Cout)   grouped pointwise weight (bf16), go = g//stride
    s2/b2   : (1, go*Cout)       folded BN2 scale / bias, tiled over the group
    o_ref   : (1, Ho, Wo*Cout)   lane-dense output block
    xp_ref  : (H+2, (W+2)*Cin)   VMEM scratch holding the zero-padded input
    """
    H = x_ref.shape[1]
    wcin = x_ref.shape[2]
    W = wcin // cin
    Ho = o_ref.shape[1]
    g = wg_ref.shape[0] // cin        # spatial columns folded into matmul K
    gcin = g * cin                    # = 128
    gcout = s2_ref.shape[1]           # = (g // stride) * Cout
    n_groups = W // g

    # ---- zero-pad the input inside the kernel (no wrapper jnp.pad / extra
    #      HBM pass).  For large tiles, zero only the 1-px border instead. ----
    xp_ref[...] = jnp.zeros(xp_ref.shape, jnp.float32)
    xp_ref[1:H + 1, cin:cin + wcin] = x_ref[0]
    xp = xp_ref[...]                                   # (H+2, (W+2)*Cin)

    # ---- depthwise 3x3: 9 taps, each a full-width lane-dense FMA (VPU).
    #      Each dw-shift is one static lane-offset window of the padded block
    #      (a single XLU lane rotation, hoisted out of the dh loop); the
    #      dh / stride selection is a cheap sublane slice.  For stride > 1
    #      only the needed rows are computed. ----
    wtap = wtap_ref[...]                               # hoisted load (9, W*Cin)
    acc = jnp.zeros((Ho, wcin), jnp.float32)
    row_hi = (Ho - 1) * stride + 1
    for dw in range(3):
        lane0 = dw * cin
        win = xp[:, lane0:lane0 + wcin]                # (H+2, W*Cin)
        for dh in range(3):
            tap = win[dh:dh + row_hi:stride, :]        # (Ho, W*Cin)
            acc = acc + tap * wtap[dh * 3 + dw]

    # BN1 + ReLU (f32 on the VPU).
    out1 = jnp.maximum(acc * s1_ref[...] + b1_ref[...], 0.0)    # (Ho, W*Cin)

    # ---- pointwise 1x1 on the MXU: bf16 inputs, f32 accumulation.
    #      g spatial columns are folded into K (=128) and the block weight
    #      also performs the stride-column subsampling, so both operands and
    #      the result stay lane-dense (no (H,W*C) <-> (H*W,C) relayouts). ----
    lhs_all = out1.astype(jnp.bfloat16)                # (Ho, W*Cin)
    wg = wg_ref[...]                                   # (g*Cin, go*Cout) bf16
    s2 = s2_ref[...]
    b2 = b2_ref[...]
    for gi in range(n_groups):
        lhs = lhs_all[:, gi * gcin:(gi + 1) * gcin]    # (Ho, 128) lane-aligned
        res = jnp.dot(lhs, wg, preferred_element_type=jnp.float32)
        res = jnp.maximum(res * s2 + b2, 0.0)          # BN2 + ReLU
        # lane-aligned, unmasked store into the lane-dense output block
        o_ref[0, :, gi * gcout:(gi + 1) * gcout] = res


@functools.partial(jax.jit, static_argnames=("stride",))
def mobilenet_block_nhwc(x, w_dw, scale1, bias1, w_pw, scale2, bias2, *,
                         stride=1):
    """MobileNet Block forward (inference-mode BN folded into scale/bias).

    x      : (N, H, W, Cin) float32, NHWC (keep activations NHWC on TPU).
    w_dw   : (3, 3, Cin)   depthwise weights (PyTorch conv1.weight[c,0,kh,kw]
             -> w_dw[kh,kw,c]).
    w_pw   : (Cin, Cout)   pointwise weights (PyTorch conv2.weight[o,i,0,0]
             -> w_pw[i,o]).
    scale*/bias*: folded BatchNorm: scale = gamma/sqrt(var+eps),
                  bias = beta - mean*scale.
    Returns (N, Ho, Wo, Cout) float32.
    """
    N, H, W, Cin = x.shape
    Cout = w_pw.shape[1]
    Ho = (H - 1) // stride + 1
    Wo = (W - 1) // stride + 1

    # Shape constraints of this small-channel (stem-layer) kernel.
    assert 128 % Cin == 0, "Cin must divide 128 for the grouped pointwise path"
    g = 128 // Cin                     # spatial columns grouped into matmul K
    assert g % stride == 0, "stride must divide 128//Cin"
    assert W % g == 0 and Wo * stride == W, \
        "W must be a multiple of 128//Cin and of stride"
    go = g // stride
    WCin = W * Cin

    # Free row-major reshape (bitcast) -- no HBM pass, no transpose.
    x_flat = x.reshape(N, H, WCin)

    # Depthwise weights / BN1 params tiled across W so each tap is a single
    # lane-dense multiply in the kernel (tiny, built once).
    wtap = jnp.tile(w_dw.reshape(3, 3, 1, Cin), (1, 1, W, 1)).reshape(9, WCin)
    s1 = jnp.tile(scale1, W).reshape(1, WCin)
    b1 = jnp.tile(bias1, W).reshape(1, WCin)

    # Grouped pointwise weight: block (wi, wo) == w_pw iff wi == wo*stride.
    # Pads the matmul to K = g*Cin = 128, N = go*Cout >= 128 and folds the
    # stride column-subsampling into the weight.  bf16 for MXU throughput.
    wg = jnp.zeros((g * Cin, go * Cout), jnp.float32)
    for wo in range(go):
        wi = wo * stride
        wg = wg.at[wi * Cin:(wi + 1) * Cin, wo * Cout:(wo + 1) * Cout].set(w_pw)
    wg = wg.astype(jnp.bfloat16)
    s2 = jnp.tile(scale2, go).reshape(1, go * Cout)
    b2 = jnp.tile(bias2, go).reshape(1, go * Cout)

    kernel = functools.partial(_block_kernel, stride=stride, cin=Cin)

    out = pl.pallas_call(
        kernel,
        out_shape=jax.ShapeDtypeStruct((N, Ho, Wo * Cout), jnp.float32),
        grid_spec=pltpu.PrefetchScalarGridSpec(
            num_scalar_prefetch=0,
            # One image per grid step: N >= 2 keeps both v7x TensorCores busy.
            # For large images / batches, fold several images per block or add
            # a row-tile axis (1-row halo) to bound per-step VMEM.
            grid=(N,),
            in_specs=[
                pl.BlockSpec((1, H, WCin), lambda n: (n, 0, 0)),
                pl.BlockSpec((9, WCin), lambda n: (0, 0)),
                pl.BlockSpec((1, WCin), lambda n: (0, 0)),
                pl.BlockSpec((1, WCin), lambda n: (0, 0)),
                pl.BlockSpec((g * Cin, go * Cout), lambda n: (0, 0)),
                pl.BlockSpec((1, go * Cout), lambda n: (0, 0)),
                pl.BlockSpec((1, go * Cout), lambda n: (0, 0)),
            ],
            out_specs=pl.BlockSpec((1, Ho, Wo * Cout), lambda n: (n, 0, 0)),
            scratch_shapes=[
                pltpu.VMEM((H + 2, (W + 2) * Cin), jnp.float32),
            ],
        ),
        compiler_params=pltpu.CompilerParams(
            dimension_semantics=("parallel",),
            vmem_limit_bytes=32 * 1024 * 1024,
        ),
    )(x_flat, wtap, s1, b1, wg, s2, b2)

    # Free row-major reshape back to NHWC.
    return out.reshape(N, Ho, Wo, Cout)


def _reference_nhwc(x, w_dw, scale1, bias1, w_pw, scale2, bias2, *, stride=1):
    """Pure-JAX reference (lax convolutions, NHWC, f32) for correctness."""
    Cin = x.shape[-1]
    Cout = w_pw.shape[1]
    out = lax.conv_general_dilated(
        x, w_dw.reshape(3, 3, 1, Cin),
        window_strides=(stride, stride), padding=((1, 1), (1, 1)),
        feature_group_count=Cin,
        dimension_numbers=("NHWC", "HWIO", "NHWC"))
    out = jnp.maximum(out * scale1 + bias1, 0.0)
    out = lax.conv_general_dilated(
        out, w_pw.reshape(1, 1, Cin, Cout),
        window_strides=(1, 1), padding=((0, 0), (0, 0)),
        dimension_numbers=("NHWC", "HWIO", "NHWC"))
    out = jnp.maximum(out * scale2 + bias2, 0.0)
    return out


if __name__ == "__main__":
    # Small shapes consistent with Block(in_planes=16, out_planes=32).
    N, Cin, Cout, H, W = 2, 16, 32, 16, 16

    key = jax.random.PRNGKey(0)
    (k_x, k_dw, k_pw, k_g1, k_b1, k_m1, k_v1, k_g2, k_b2, k_m2, k_v2) = (
        jax.random.split(key, 11))

    x = jax.random.normal(k_x, (N, H, W, Cin), jnp.float32)     # NHWC

    # Deterministic synthetic parameters (shapes per nn.Module __init__).
    w_dw = jax.random.normal(k_dw, (3, 3, Cin), jnp.float32) * 0.2   # depthwise
    w_pw = jax.random.normal(k_pw, (Cin, Cout), jnp.float32) * 0.2   # pointwise

    eps = 1e-5
    gamma1 = 1.0 + 0.1 * jax.random.normal(k_g1, (Cin,), jnp.float32)
    beta1 = 0.1 * jax.random.normal(k_b1, (Cin,), jnp.float32)
    mean1 = 0.1 * jax.random.normal(k_m1, (Cin,), jnp.float32)
    var1 = jnp.abs(1.0 + 0.1 * jax.random.normal(k_v1, (Cin,), jnp.float32))
    scale1 = gamma1 / jnp.sqrt(var1 + eps)
    bias1 = beta1 - mean1 * scale1

    gamma2 = 1.0 + 0.1 * jax.random.normal(k_g2, (Cout,), jnp.float32)
    beta2 = 0.1 * jax.random.normal(k_b2, (Cout,), jnp.float32)
    mean2 = 0.1 * jax.random.normal(k_m2, (Cout,), jnp.float32)
    var2 = jnp.abs(1.0 + 0.1 * jax.random.normal(k_v2, (Cout,), jnp.float32))
    scale2 = gamma2 / jnp.sqrt(var2 + eps)
    bias2 = beta2 - mean2 * scale2

    # Exercise both stride=1 and stride=2 paths of the fused kernel.
    for stride in (1, 2):
        out = mobilenet_block_nhwc(x, w_dw, scale1, bias1, w_pw, scale2, bias2,
                                   stride=stride)
        out = jax.block_until_ready(out)
        ref = _reference_nhwc(x, w_dw, scale1, bias1, w_pw, scale2, bias2,
                              stride=stride)
        # Tolerance accounts for bf16 MXU inputs (f32 accumulation) in the
        # pointwise stage; the f32 reference is the exact module semantics.
        np.testing.assert_allclose(np.asarray(out), np.asarray(ref),
                                   rtol=2e-2, atol=2e-2)

    print("KERNEL_OK")
</pallas_src>

<mosaic_0001>
module attributes {stable_mosaic.version = 11 : i64} {
  func.func @_block_kernel(%arg0: i32, %arg1: memref<1x16x256xf32, #tpu.memory_space<vmem>>, %arg2: memref<9x256xf32, #tpu.memory_space<vmem>>, %arg3: memref<1x256xf32, #tpu.memory_space<vmem>>, %arg4: memref<1x256xf32, #tpu.memory_space<vmem>>, %arg5: memref<128x256xbf16, #tpu.memory_space<vmem>>, %arg6: memref<1x256xf32, #tpu.memory_space<vmem>>, %arg7: memref<1x256xf32, #tpu.memory_space<vmem>>, %arg8: memref<1x16x512xf32, #tpu.memory_space<vmem>>, %arg9: memref<18x288xf32, #tpu.memory_space<vmem>>) attributes {dimension_semantics = [#tpu.dimension_semantics<parallel>], iteration_bounds = array<i64: 2>, scalar_prefetch = 0 : i64, scratch_operands = 1 : i64, tpu.core_type = #tpu.core_type<tc>, window_params = [{transform_indices = @transform_0, window_bounds = array<i64: 1, 16, 256>}, {pipeline_mode = #tpu.pipeline_mode<synchronous>, transform_indices = @transform_1, window_bounds = array<i64: 9, 256>}, {pipeline_mode = #tpu.pipeline_mode<synchronous>, transform_indices = @transform_2, window_bounds = array<i64: 1, 256>}, {pipeline_mode = #tpu.pipeline_mode<synchronous>, transform_indices = @transform_3, window_bounds = array<i64: 1, 256>}, {pipeline_mode = #tpu.pipeline_mode<synchronous>, transform_indices = @transform_4, window_bounds = array<i64: 128, 256>}, {pipeline_mode = #tpu.pipeline_mode<synchronous>, transform_indices = @transform_5, window_bounds = array<i64: 1, 256>}, {pipeline_mode = #tpu.pipeline_mode<synchronous>, transform_indices = @transform_6, window_bounds = array<i64: 1, 256>}, {transform_indices = @transform_7, window_bounds = array<i64: 1, 16, 512>}]} {
    %cst = arith.constant 0.000000e+00 : f32
    %0 = vector.broadcast %cst : f32 to vector<18x288xf32>
    %c0 = arith.constant 0 : index
    %c0_0 = arith.constant 0 : index
    %1 = vector.load %arg9[%c0, %c0_0] : memref<18x288xf32, #tpu.memory_space<vmem>>, vector<18x288xf32>
    tpu.vector_store %arg9[%c0, %c0_0], %0 {strides = array<i32>} : memref<18x288xf32, #tpu.memory_space<vmem>>, vector<18x288xf32>,
    %c0_1 = arith.constant 0 : index
    %c0_2 = arith.constant 0 : index
    %c0_3 = arith.constant 0 : index
    %2 = vector.load %arg1[%c0_1, %c0_2, %c0_3] : memref<1x16x256xf32, #tpu.memory_space<vmem>>, vector<1x16x256xf32>
    %3 = vector.shape_cast %2 : vector<1x16x256xf32> to vector<16x256xf32>
    %c1 = arith.constant 1 : index
    %c16 = arith.constant 16 : index
    %4 = vector.load %arg9[%c1, %c16] : memref<18x288xf32, #tpu.memory_space<vmem>>, vector<16x256xf32>
    tpu.vector_store %arg9[%c1, %c16], %3 {strides = array<i32>} : memref<18x288xf32, #tpu.memory_space<vmem>>, vector<16x256xf32>,
    %c0_4 = arith.constant 0 : index
    %c0_5 = arith.constant 0 : index
    %5 = vector.load %arg9[%c0_4, %c0_5] : memref<18x288xf32, #tpu.memory_space<vmem>>, vector<18x288xf32>
    %c0_6 = arith.constant 0 : index
    %c0_7 = arith.constant 0 : index
    %6 = vector.load %arg2[%c0_6, %c0_7] : memref<9x256xf32, #tpu.memory_space<vmem>>, vector<9x256xf32>
    %cst_8 = arith.constant 0.000000e+00 : f32
    %7 = vector.broadcast %cst_8 : f32 to vector<16x256xf32>
    %8 = vector.extract_strided_slice %5 {offsets = [0, 0], sizes = [18, 256], strides = [1, 1]} : vector<18x288xf32> to vector<18x256xf32>
    %9 = vector.extract_strided_slice %8 {offsets = [0, 0], sizes = [16, 256], strides = [1, 1]} : vector<18x256xf32> to vector<16x256xf32>
    %10 = vector.extract_strided_slice %6 {offsets = [0, 0], sizes = [1, 256], strides = [1, 1]} : vector<9x256xf32> to vector<1x256xf32>
    %11 = vector.shape_cast %10 : vector<1x256xf32> to vector<256xf32>
    %12 = vector.shape_cast %11 : vector<256xf32> to vector<1x256xf32>
    %13 = vector.broadcast %12 : vector<1x256xf32> to vector<16x256xf32>
    %14 = arith.mulf %9, %13 : vector<16x256xf32>
    %15 = arith.addf %7, %14 : vector<16x256xf32>
    %16 = vector.extract_strided_slice %8 {offsets = [1, 0], sizes = [16, 256], strides = [1, 1]} : vector<18x256xf32> to vector<16x256xf32>
    %17 = vector.extract_strided_slice %6 {offsets = [3, 0], sizes = [1, 256], strides = [1, 1]} : vector<9x256xf32> to vector<1x256xf32>
    %18 = vector.shape_cast %17 : vector<1x256xf32> to vector<256xf32>
    %19 = vector.shape_cast %18 : vector<256xf32> to vector<1x256xf32>
    %20 = vector.broadcast %19 : vector<1x256xf32> to vector<16x256xf32>
    %21 = arith.mulf %16, %20 : vector<16x256xf32>
    %22 = arith.addf %15, %21 : vector<16x256xf32>
    %23 = vector.extract_strided_slice %8 {offsets = [2, 0], sizes = [16, 256], strides = [1, 1]} : vector<18x256xf32> to vector<16x256xf32>
    %24 = vector.extract_strided_slice %6 {offsets = [6, 0], sizes = [1, 256], strides = [1, 1]} : vector<9x256xf32> to vector<1x256xf32>
    %25 = vector.shape_cast %24 : vector<1x256xf32> to vector<256xf32>
    %26 = vector.shape_cast %25 : vector<256xf32> to vector<1x256xf32>
    %27 = vector.broadcast %26 : vector<1x256xf32> to vector<16x256xf32>
    %28 = arith.mulf %23, %27 : vector<16x256xf32>
    %29 = arith.addf %22, %28 : vector<16x256xf32>
    %30 = vector.extract_strided_slice %5 {offsets = [0, 16], sizes = [18, 256], strides = [1, 1]} : vector<18x288xf32> to vector<18x256xf32>
    %31 = vector.extract_strided_slice %30 {offsets = [0, 0], sizes = [16, 256], strides = [1, 1]} : vector<18x256xf32> to vector<16x256xf32>
    %32 = vector.extract_strided_slice %6 {offsets = [1, 0], sizes = [1, 256], strides = [1, 1]} : vector<9x256xf32> to vector<1x256xf32>
    %33 = vector.shape_cast %32 : vector<1x256xf32> to vector<256xf32>
    %34 = vector.shape_cast %33 : vector<256xf32> to vector<1x256xf32>
    %35 = vector.broadcast %34 : vector<1x256xf32> to vector<16x256xf32>
    %36 = arith.mulf %31, %35 : vector<16x256xf32>
    %37 = arith.addf %29, %36 : vector<16x256xf32>
    %38 = vector.extract_strided_slice %30 {offsets = [1, 0], sizes = [16, 256], strides = [1, 1]} : vector<18x256xf32> to vector<16x256xf32>
    %39 = vector.extract_strided_slice %6 {offsets = [4, 0], sizes = [1, 256], strides = [1, 1]} : vector<9x256xf32> to vector<1x256xf32>
    %40 = vector.shape_cast %39 : vector<1x256xf32> to vector<256xf32>
    %41 = vector.shape_cast %40 : vector<256xf32> to vector<1x256xf32>
    %42 = vector.broadcast %41 : vector<1x256xf32> to vector<16x256xf32>
    %43 = arith.mulf %38, %42 : vector<16x256xf32>
    %44 = arith.addf %37, %43 : vector<16x256xf32>
    %45 = vector.extract_strided_slice %30 {offsets = [2, 0], sizes = [16, 256], strides = [1, 1]} : vector<18x256xf32> to vector<16x256xf32>
    %46 = vector.extract_strided_slice %6 {offsets = [7, 0], sizes = [1, 256], strides = [1, 1]} : vector<9x256xf32> to vector<1x256xf32>
    %47 = vector.shape_cast %46 : vector<1x256xf32> to vector<256xf32>
    %48 = vector.shape_cast %47 : vector<256xf32> to vector<1x256xf32>
    %49 = vector.broadcast %48 : vector<1x256xf32> to vector<16x256xf32>
    %50 = arith.mulf %45, %49 : vector<16x256xf32>
    %51 = arith.addf %44, %50 : vector<16x256xf32>
    %52 = vector.extract_strided_slice %5 {offsets = [0, 32], sizes = [18, 256], strides = [1, 1]} : vector<18x288xf32> to vector<18x256xf32>
    %53 = vector.extract_strided_slice %52 {offsets = [0, 0], sizes = [16, 256], strides = [1, 1]} : vector<18x256xf32> to vector<16x256xf32>
    %54 = vector.extract_strided_slice %6 {offsets = [2, 0], sizes = [1, 256], strides = [1, 1]} : vector<9x256xf32> to vector<1x256xf32>
    %55 = vector.shape_cast %54 : vector<1x256xf32> to vector<256xf32>
    %56 = vector.shape_cast %55 : vector<256xf32> to vector<1x256xf32>
    %57 = vector.broadcast %56 : vector<1x256xf32> to vector<16x256xf32>
    %58 = arith.mulf %53, %57 : vector<16x256xf32>
    %59 = arith.addf %51, %58 : vector<16x256xf32>
    %60 = vector.extract_strided_slice %52 {offsets = [1, 0], sizes = [16, 256], strides = [1, 1]} : vector<18x256xf32> to vector<16x256xf32>
    %61 = vector.extract_strided_slice %6 {offsets = [5, 0], sizes = [1, 256], strides = [1, 1]} : vector<9x256xf32> to vector<1x256xf32>
    %62 = vector.shape_cast %61 : vector<1x256xf32> to vector<256xf32>
    %63 = vector.shape_cast %62 : vector<256xf32> to vector<1x256xf32>
    %64 = vector.broadcast %63 : vector<1x256xf32> to vector<16x256xf32>
    %65 = arith.mulf %60, %64 : vector<16x256xf32>
    %66 = arith.addf %59, %65 : vector<16x256xf32>
    %67 = vector.extract_strided_slice %52 {offsets = [2, 0], sizes = [16, 256], strides = [1, 1]} : vector<18x256xf32> to vector<16x256xf32>
    %68 = vector.extract_strided_slice %6 {offsets = [8, 0], sizes = [1, 256], strides = [1, 1]} : vector<9x256xf32> to vector<1x256xf32>
    %69 = vector.shape_cast %68 : vector<1x256xf32> to vector<256xf32>
    %70 = vector.shape_cast %69 : vector<256xf32> to vector<1x256xf32>
    %71 = vector.broadcast %70 : vector<1x256xf32> to vector<16x256xf32>
    %72 = arith.mulf %67, %71 : vector<16x256xf32>
    %73 = arith.addf %66, %72 : vector<16x256xf32>
    %c0_9 = arith.constant 0 : index
    %c0_10 = arith.constant 0 : index
    %74 = vector.load %arg3[%c0_9, %c0_10] : memref<1x256xf32, #tpu.memory_space<vmem>>, vector<1x256xf32>
    %75 = vector.broadcast %74 : vector<1x256xf32> to vector<16x256xf32>
    %76 = arith.mulf %73, %75 : vector<16x256xf32>
    %c0_11 = arith.constant 0 : index
    %c0_12 = arith.constant 0 : index
    %77 = vector.load %arg4[%c0_11, %c0_12] : memref<1x256xf32, #tpu.memory_space<vmem>>, vector<1x256xf32>
    %78 = vector.broadcast %77 : vector<1x256xf32> to vector<16x256xf32>
    %79 = arith.addf %76, %78 : vector<16x256xf32>
    %cst_13 = arith.constant 0.000000e+00 : f32
    %80 = vector.broadcast %cst_13 : f32 to vector<16x256xf32>
    %81 = arith.maximumf %79, %80 : vector<16x256xf32>
    %82 = arith.truncf %81 : vector<16x256xf32> to vector<16x256xbf16>
    %c0_14 = arith.constant 0 : index
    %c0_15 = arith.constant 0 : index
    %83 = vector.load %arg5[%c0_14, %c0_15] : memref<128x256xbf16, #tpu.memory_space<vmem>>, vector<128x256xbf16>
    %c0_16 = arith.constant 0 : index
    %c0_17 = arith.constant 0 : index
    %84 = vector.load %arg6[%c0_16, %c0_17] : memref<1x256xf32, #tpu.memory_space<vmem>>, vector<1x256xf32>
    %c0_18 = arith.constant 0 : index
    %c0_19 = arith.constant 0 : index
    %85 = vector.load %arg7[%c0_18, %c0_19] : memref<1x256xf32, #tpu.memory_space<vmem>>, vector<1x256xf32>
    %86 = vector.extract_strided_slice %82 {offsets = [0, 0], sizes = [16, 128], strides = [1, 1]} : vector<16x256xbf16> to vector<16x128xbf16>
    %cst_20 = arith.constant dense<0.000000e+00> : vector<16x256xf32>
    %87 = tpu.matmul %86, %83, %cst_20 {dimension_numbers = #tpu.dot_dimension_numbers<[1], [0], [0], [1], [0, 0, 1, 1], [], []>} : vector<16x128xbf16>, vector<128x256xbf16>, vector<16x256xf32> -> vector<16x256xf32>
    %88 = vector.broadcast %84 : vector<1x256xf32> to vector<16x256xf32>
    %89 = arith.mulf %87, %88 : vector<16x256xf32>
    %90 = vector.broadcast %85 : vector<1x256xf32> to vector<16x256xf32>
    %91 = arith.addf %89, %90 : vector<16x256xf32>
    %cst_21 = arith.constant 0.000000e+00 : f32
    %92 = vector.broadcast %cst_21 : f32 to vector<16x256xf32>
    %93 = arith.maximumf %91, %92 : vector<16x256xf32>
    %c0_22 = arith.constant 0 : index
    %c0_23 = arith.constant 0 : index
    %c0_24 = arith.constant 0 : index
    %94 = vector.load %arg8[%c0_22, %c0_23, %c0_24] : memref<1x16x512xf32, #tpu.memory_space<vmem>>, vector<1x16x256xf32>
    %95 = vector.shape_cast %94 : vector<1x16x256xf32> to vector<16x256xf32>
    %96 = vector.shape_cast %93 : vector<16x256xf32> to vector<1x16x256xf32>
    tpu.vector_store %arg8[%c0_22, %c0_23, %c0_24], %96 {strides = array<i32>} : memref<1x16x512xf32, #tpu.memory_space<vmem>>, vector<1x16x256xf32>,
    %97 = vector.extract_strided_slice %82 {offsets = [0, 128], sizes = [16, 128], strides = [1, 1]} : vector<16x256xbf16> to vector<16x128xbf16>
    %cst_25 = arith.constant dense<0.000000e+00> : vector<16x256xf32>
    %98 = tpu.matmul %97, %83, %cst_25 {dimension_numbers = #tpu.dot_dimension_numbers<[1], [0], [0], [1], [0, 0, 1, 1], [], []>} : vector<16x128xbf16>, vector<128x256xbf16>, vector<16x256xf32> -> vector<16x256xf32>
    %99 = vector.broadcast %84 : vector<1x256xf32> to vector<16x256xf32>
    %100 = arith.mulf %98, %99 : vector<16x256xf32>
    %101 = vector.broadcast %85 : vector<1x256xf32> to vector<16x256xf32>
    %102 = arith.addf %100, %101 : vector<16x256xf32>
    %cst_26 = arith.constant 0.000000e+00 : f32
    %103 = vector.broadcast %cst_26 : f32 to vector<16x256xf32>
    %104 = arith.maximumf %102, %103 : vector<16x256xf32>
    %c0_27 = arith.constant 0 : index
    %c0_28 = arith.constant 0 : index
    %c256 = arith.constant 256 : index
    %105 = vector.load %arg8[%c0_27, %c0_28, %c256] : memref<1x16x512xf32, #tpu.memory_space<vmem>>, vector<1x16x256xf32>
    %106 = vector.shape_cast %105 : vector<1x16x256xf32> to vector<16x256xf32>
    %107 = vector.shape_cast %104 : vector<16x256xf32> to vector<1x16x256xf32>
    tpu.vector_store %arg8[%c0_27, %c0_28, %c256], %107 {strides = array<i32>} : memref<1x16x512xf32, #tpu.memory_space<vmem>>, vector<1x16x256xf32>,
    return
  }
  func.func @transform_0(%arg0: i32) -> (i32, i32, i32) {
    %c0_i32 = arith.constant 0 : i32
    %c0_i32_0 = arith.constant 0 : i32
    %c0_i32_1 = arith.constant 0 : i32
    return %arg0, %c0_i32, %c0_i32_0 : i32, i32, i32
  }
  func.func @transform_1(%arg0: i32) -> (i32, i32) {
    %c0_i32 = arith.constant 0 : i32
    %c0_i32_0 = arith.constant 0 : i32
    %c0_i32_1 = arith.constant 0 : i32
    return %c0_i32, %c0_i32_0 : i32, i32
  }
  func.func @transform_2(%arg0: i32) -> (i32, i32) {
    %c0_i32 = arith.constant 0 : i32
    %c0_i32_0 = arith.constant 0 : i32
    %c0_i32_1 = arith.constant 0 : i32
    return %c0_i32, %c0_i32_0 : i32, i32
  }
  func.func @transform_3(%arg0: i32) -> (i32, i32) {
    %c0_i32 = arith.constant 0 : i32
    %c0_i32_0 = arith.constant 0 : i32
    %c0_i32_1 = arith.constant 0 : i32
    return %c0_i32, %c0_i32_0 : i32, i32
  }
  func.func @transform_4(%arg0: i32) -> (i32, i32) {
    %c0_i32 = arith.constant 0 : i32
    %c0_i32_0 = arith.constant 0 : i32
    %c0_i32_1 = arith.constant 0 : i32
    return %c0_i32, %c0_i32_0 : i32, i32
  }
  func.func @transform_5(%arg0: i32) -> (i32, i32) {
    %c0_i32 = arith.constant 0 : i32
    %c0_i32_0 = arith.constant 0 : i32
    %c0_i32_1 = arith.constant 0 : i32
    return %c0_i32, %c0_i32_0 : i32, i32
  }
  func.func @transform_6(%arg0: i32) -> (i32, i32) {
    %c0_i32 = arith.constant 0 : i32
    %c0_i32_0 = arith.constant 0 : i32
    %c0_i32_1 = arith.constant 0 : i32
    return %c0_i32, %c0_i32_0 : i32, i32
  }
  func.func @transform_7(%arg0: i32) -> (i32, i32, i32) {
    %c0_i32 = arith.constant 0 : i32
    %c0_i32_0 = arith.constant 0 : i32
    %c0_i32_1 = arith.constant 0 : i32
    return %arg0, %c0_i32, %c0_i32_0 : i32, i32, i32
  }
}

</mosaic_0001>

<bundles_post_ra>
// kernel: tile.31
= control target key start
LH: loop header
LB: loop body
LE: loop exit
PB: predicated region body
PF: predicated region fallthrough
CT: control target
= control target key end

     0   :  { %s28_s0 = inlined_call_operand.vmem [shape: f32[16], index: 0, kind: input, shape index: {}]   ;;  %s29_s1 = inlined_call_operand.vmem [shape: f32[16,16], index: 1, kind: output, shape index: {}]  }
   0x1   :  { %v4_v0 = vld [vmem:[%s28_s0] ss:$0 sm:$0xff] }
   0x2   :  { %5 = vst [vmem:[%s29_s1] sm:$0xff] %v4_v0 }
   0x3   :  { %8 = vst [vmem:[%s29_s1 + $0x8] sm:$0xff] %v4_v0 }

// kernel: tile.41
= control target key start
LH: loop header
LB: loop body
LE: loop exit
PB: predicated region body
PF: predicated region fallthrough
CT: control target
= control target key end

     0   :  { %s22_s0 = inlined_call_operand.vmem [shape: f32[32], index: 0, kind: input, shape index: {}]   ;;  %s23_s1 = inlined_call_operand.vmem [shape: f32[8,32], index: 1, kind: output, shape index: {}]  }
   0x1   :  { %v4_v0 = vld [vmem:[%s22_s0] ss:$0 sm:$0xff] }
   0x2   :  { %5 = vst [vmem:[%s23_s1] sm:$0xff] %v4_v0 }

// kernel: tile.42
= control target key start
LH: loop header
LB: loop body
LE: loop exit
PB: predicated region body
PF: predicated region fallthrough
CT: control target
= control target key end

     0   :  { %s7_s6 = smov 3  ;;  %s46_s9 = smov 96   ;;  %vm4_vm0 = vcmask 261120   ;;  %vm11_vm1 = vcmask 1048320   ;;  %vm18_vm2 = vcmask 785920   ;;  %vm25_vm3 = vcmask 523520   ;;  %s77_s0 = inlined_call_operand.vmem [shape: f32[8,32], index: 0, kind: input, shape index: {}]   ;;  %s78_s1 = inlined_call_operand.vmem [shape: f32[1,256], index: 1, kind: output, shape index: {}]  }
   0x1   :  { %v39_v0 = vld [vmem:[%s77_s0 + $0x3] ss:$4 sm:%s7_s6]   ;;  %s21_s10 = smov 3  ;;  %s14_s13 = smov 3 }
   0x2   :  { %9 = vrot.lane.b32.xlu0 %v39_v0, %s46_s9  ;;  %v41_v1 = vld [vmem:[%s77_s0 + $0x1] ss:$4 sm:%s21_s10]   ;;  %s47_s14 = smov 32   ;;  %s48_s17 = smov 64  }
   0x3   :  { %23 = vrot.lane.b32.xlu1 %v41_v1, %s47_s14  ;;  %v40_v2 = vld [vmem:[%s77_s0 + $0x2] ss:$4 sm:%s14_s13]   ;;  %s2_s18 = smov 3 }
   0x4   :  { %v3_v3 = vld [vmem:[%s77_s0] ss:$4 sm:%s2_s18]  }
   0x5   :  { %5 = vst.msk [vmem:[#allocation0] ss:$8 sm:$0x3] %vm4_vm0, %v3_v3  }
   0xa   :  { %16 = vrot.lane.b32.xlu0 %v40_v2, %s48_s17 }
  0x74   :  { %v10_v4 = vpop.permute.xlu0 %9  }
  0x75   :  { %12 = vst.msk [vmem:[#allocation0] ss:$8 sm:$0x3] %vm11_vm1, %v10_v4   ;;  %v24_v5 = vpop.permute.xlu1 %23  }
  0x7c   :  { %v17_v6 = vpop.permute.xlu0 %16  }
  0x7d   :  { %19 = vst.msk [vmem:[#allocation0] ss:$8 sm:$0x3] %vm18_vm2, %v17_v6  }
  0x7e   :  { %26 = vst.msk [vmem:[#allocation0] ss:$8 sm:$0x3] %vm25_vm3, %v24_v5  }
  0x85   :  { %v29_v7 = vld [vmem:[#allocation0] sm:$0x1]  ;;  %v34_v8 = vld [vmem:[#allocation0 + $0x8] sm:$0x1] }
  0x86   :  { %32 = vst [vmem:[%s78_s1] sm:$0x1] %v29_v7 }
  0x87   :  { %42 = vst [vmem:[%s78_s1 + $0x1] sm:$0x1] %v34_v8 }

// kernel: tile.32
= control target key start
LH: loop header
LB: loop body
LE: loop exit
PB: predicated region body
PF: predicated region fallthrough
CT: control target
= control target key end

     0   :  { %s7_s6 = smov 3  ;;  %s21_s9 = smov 3  ;;  %vm4_vm0 = vcmask 130048   ;;  %vm11_vm1 = vcmask 1048448   ;;  %vm18_vm2 = vcmask 917248   ;;  %vm25_vm3 = vcmask 786048   ;;  %s129_s0 = inlined_call_operand.vmem [shape: f32[16,16], index: 0, kind: input, shape index: {}]   ;;  %s130_s1 = inlined_call_operand.vmem [shape: f32[1,256], index: 1, kind: output, shape index: {}]  }
   0x1   :  { %v67_v0 = vld [vmem:[%s129_s0 + $0x7] ss:$8 sm:%s7_s6]   ;;  %s82_s10 = smov 112   ;;  %v69_v1 = vld [vmem:[%s129_s0 + $0x5] ss:$8 sm:%s21_s9]   ;;  %s83_s13 = smov 80  }
   0x2   :  { %9 = vrot.lane.b32.xlu0 %v67_v0, %s82_s10  ;;  %23 = vrot.lane.b32.xlu1 %v69_v1, %s83_s13  ;;  %s14_s14 = smov 3  ;;  %s28_s15 = smov 3  ;;  %vm32_vm4 = vcmask 654848   ;;  %vm39_vm5 = vcmask 523648   ;;  %vm46_vm6 = vcmask 392448   ;;  %vm53_vm7 = vcmask 261248  }
   0x3   :  { %s35_s16 = smov 3  ;;  %v68_v3 = vld [vmem:[%s129_s0 + $0x6] ss:$8 sm:%s14_s14]   ;;  %s84_s21 = smov 48   ;;  %v70_v4 = vld [vmem:[%s129_s0 + $0x4] ss:$8 sm:%s28_s15]  }
   0x4   :  { %v71_v2 = vld [vmem:[%s129_s0 + $0x3] ss:$8 sm:%s35_s16]   ;;  %s42_s24 = smov 3  ;;  %s85_s25 = smov 96  }
   0x5   :  { %37 = vrot.lane.b32.xlu2 %v71_v2, %s84_s21  ;;  %s86_s26 = smov 64   ;;  %s49_s27 = smov 3  ;;  %v72_v5 = vld [vmem:[%s129_s0 + $0x2] ss:$8 sm:%s42_s24]  }
   0x6   :  { %v73_v6 = vld [vmem:[%s129_s0 + $0x1] ss:$8 sm:%s49_s27]   ;;  %s87_s3 = smov 32   ;;  %s88_s4 = smov 16  }
   0x7   :  { %s2_s5 = smov 3 }
   0x8   :  { %v3_v7 = vld [vmem:[%s129_s0] ss:$8 sm:%s2_s5]  }
   0x9   :  { %5 = vst.msk [vmem:[#allocation0] ss:$8 sm:$0x3] %vm4_vm0, %v3_v7  }
   0xa   :  { %16 = vrot.lane.b32.xlu0 %v68_v3, %s85_s25  ;;  %30 = vrot.lane.b32.xlu1 %v70_v4, %s86_s26 }
   0xd   :  { %44 = vrot.lane.b32.xlu2 %v72_v5, %s87_s3 }
  0x12   :  { %51 = vrot.lane.b32.xlu0 %v73_v6, %s88_s4 }
  0x5f   :  { %v38_v8 = vpop.permute.xlu2 %37  }
  0x67   :  { %v45_v9 = vpop.permute.xlu2 %44  }
  0x74   :  { %v10_v10 = vpop.permute.xlu0 %9   ;;  %v24_v11 = vpop.permute.xlu1 %23  }
  0x75   :  { %12 = vst.msk [vmem:[#allocation0] ss:$8 sm:$0x3] %vm11_vm1, %v10_v10  }
  0x7c   :  { %v17_v12 = vpop.permute.xlu0 %16   ;;  %v31_v13 = vpop.permute.xlu1 %30  }
  0x7d   :  { %19 = vst.msk [vmem:[#allocation0] ss:$8 sm:$0x3] %vm18_vm2, %v17_v12  }
  0x7e   :  { %26 = vst.msk [vmem:[#allocation0] ss:$8 sm:$0x3] %vm25_vm3, %v24_v11  }
  0x7f   :  { %33 = vst.msk [vmem:[#allocation0] ss:$8 sm:$0x3] %vm32_vm4, %v31_v13  }
  0x80   :  { %40 = vst.msk [vmem:[#allocation0] ss:$8 sm:$0x3] %vm39_vm5, %v38_v8  }
  0x81   :  { %47 = vst.msk [vmem:[#allocation0] ss:$8 sm:$0x3] %vm46_vm6, %v45_v9  }
  0x84   :  { %v52_v14 = vpop.permute.xlu0 %51  }
  0x85   :  { %54 = vst.msk [vmem:[#allocation0] ss:$8 sm:$0x3] %vm53_vm7, %v52_v14  }
  0x8c   :  { %v57_v15 = vld [vmem:[#allocation0] sm:$0x1]  ;;  %v62_v16 = vld [vmem:[#allocation0 + $0x8] sm:$0x1] }
  0x8d   :  { %60 = vst [vmem:[%s130_s1] sm:$0x1] %v57_v15 }
  0x8e   :  { %74 = vst [vmem:[%s130_s1 + $0x1] sm:$0x1] %v62_v16 }

// kernel: tile.27
= control target key start
LH: loop header
LB: loop body
LE: loop exit
PB: predicated region body
PF: predicated region fallthrough
CT: control target
= control target key end

     0   :  { %s81_s6 = smov 3  ;;  %s36_s9 = smov 3  ;;  %vm41_vm0 = vcmask 1043458   ;;  %vm46_vm1 = vcmask 1045508   ;;  %vm51_vm2 = vcmask 1047558   ;;  %vm4_vm3 = vcmask 1047556   ;;  %s878_s0 = inlined_call_operand.vmem [shape: f32[3,1,3,16,1,1,16], index: 0, kind: input, shape index: {}]   ;;  %s879_s1 = inlined_call_operand.vmem [shape: f32[9,256], index: 1, kind: output, shape index: {}]  }
   0x1   :  { %v426_v0 = vld [vmem:[%s878_s0 + $0x87] ss:$8 sm:%s81_s6]   ;;  %s39_s10 = smov 12  ;;  %s501_s11 = smov 112   ;;  %vm6_vm4 = vcmask 130048   ;;  %vm55_vm5 = vcmask 1048448  }
   0x2   :  { %83 = vrot.lane.b32.xlu1 %v426_v0, %s501_s11  ;;  %v417_v1 = vld [vmem:[%s878_s0 + $0x7] ss:$16 sm:%s36_s9]   ;;  %s44_s14 = smov 48  ;;  %s49_s15 = smov 192  ;;  %vm108_vm6 = vcmask 917248   ;;  %vm161_vm7 = vcmask 786048  }
   0x3   :  { %v418_v2 = vld [vmem:[%s878_s0 + $0x7] ss:$16 sm:%s39_s10]   ;;  %s89_s20 = smov 3  ;;  %s92_s21 = smov 12  ;;  %vm214_vm8 = vcmask 654848   ;;  %vm267_vm9 = vcmask 523648  }
   0x4   :  { %v419_v3 = vld [vmem:[%s878_s0 + $0x7] ss:$16 sm:%s44_s14]   ;;  %v42_v4 = vsel %vm41_vm0, %v418_v2, %v417_v1  ;;  %v428_v6 = vld [vmem:[%s878_s0 + $0x6] ss:$16 sm:%s89_s20]   ;;  %s97_s26 = smov 48  ;;  %s102_s27 = smov 192 }
   0x5   :  { %v420_v5 = vld [vmem:[%s878_s0 + $0x7] ss:$16 sm:%s49_s15]   ;;  %v47_v7 = vsel %vm46_vm1, %v419_v3, %v42_v4  ;;  %v429_v8 = vld [vmem:[%s878_s0 + $0x6] ss:$16 sm:%s92_s21]   ;;  %s58_s3 = smov 3  ;;  %s61_s8 = smov 12 }
   0x6   :  { %v430_v9 = vld [vmem:[%s878_s0 + $0x6] ss:$16 sm:%s97_s26]   ;;  %v52_v10 = vsel %vm51_vm2, %v420_v5, %v47_v7  ;;  %v95_v11 = vsel %vm41_vm0, %v429_v8, %v428_v6  ;;  %v421_v13 = vld [vmem:[%s878_s0 + $0xf] ss:$16 sm:%s58_s3]   ;;  %s66_s9 = smov 48  ;;  %s71_s13 = smov 192 }
   0x7   :  { %v431_v12 = vld [vmem:[%s878_s0 + $0x6] ss:$16 sm:%s102_s27]   ;;  %53 = vrot.lane.b32.xlu0 %v52_v10, %s501_s11  ;;  %v100_v14 = vsel %vm46_vm1, %v430_v9, %v95_v11  ;;  %s164_s18 = smov 3  ;;  %s167_s19 = smov 12  ;;  %vm320_vm10 = vcmask 392448   ;;  %vm373_vm11 = vcmask 261248  }
   0x8   :  { %v422_v15 = vld [vmem:[%s878_s0 + $0xf] ss:$16 sm:%s61_s8]   ;;  %v105_v16 = vsel %vm51_vm2, %v431_v12, %v100_v14  ;;  %v443_v21 = vld [vmem:[%s878_s0 + $0xd] ss:$16 sm:%s164_s18]   ;;  %s172_s24 = smov 48  ;;  %s177_s25 = smov 192 }
   0x9   :  { %v64_v17 = vsel %vm41_vm0, %v422_v15, %v421_v13  ;;  %v423_v18 = vld [vmem:[%s878_s0 + $0xf] ss:$16 sm:%s66_s9]   ;;  %v444_v22 = vld [vmem:[%s878_s0 + $0xd] ss:$16 sm:%s167_s19]   ;;  %s502_s26 = smov 96   ;;  %s142_s29 = smov 3 }
   0xa   :  { %v424_v19 = vld [vmem:[%s878_s0 + $0xf] ss:$16 sm:%s71_s13]   ;;  %v69_v20 = vsel %vm46_vm1, %v423_v18, %v64_v17  ;;  %106 = vrot.lane.b32.xlu1 %v105_v16, %s502_s26  ;;  %v170_v23 = vsel %vm41_vm0, %v444_v22, %v443_v21  ;;  %s145_s30 = smov 12  ;;  %s150_s4 = smov 48 }
   0xb   :  { %v445_v24 = vld [vmem:[%s878_s0 + $0xd] ss:$16 sm:%s172_s24]   ;;  %v439_v25 = vld [vmem:[%s878_s0 + $0x5] ss:$16 sm:%s142_s29]   ;;  %v74_v26 = vsel %vm51_vm2, %v424_v19, %v69_v20  ;;  %s111_s9 = smov 3  ;;  %s114_s10 = smov 12 }
   0xc   :  { %v175_v27 = vsel %vm46_vm1, %v445_v24, %v170_v23  ;;  %v446_v28 = vld [vmem:[%s878_s0 + $0xd] ss:$16 sm:%s177_s25]   ;;  %v440_v29 = vld [vmem:[%s878_s0 + $0x5] ss:$16 sm:%s145_s30]   ;;  %s119_s16 = smov 48  ;;  %s124_s17 = smov 192 }
   0xd   :  { %v441_v30 = vld [vmem:[%s878_s0 + $0x5] ss:$16 sm:%s150_s4]   ;;  %v432_v31 = vld [vmem:[%s878_s0 + $0xe] ss:$16 sm:%s111_s9]   ;;  %v148_v32 = vsel %vm41_vm0, %v440_v29, %v439_v25  ;;  %s155_s18 = smov 192  ;;  %s217_s23 = smov 3  ;;  %v180_v35 = vsel %vm51_vm2, %v446_v28, %v175_v27 }
   0xe   :  { %v433_v33 = vld [vmem:[%s878_s0 + $0xe] ss:$16 sm:%s114_s10]   ;;  %s220_s25 = smov 12  ;;  %s225_s27 = smov 48  ;;  %v454_v39 = vld [vmem:[%s878_s0 + $0xc] ss:$16 sm:%s217_s23]   ;;  %v153_v41 = vsel %vm46_vm1, %v441_v30, %v148_v32 }
   0xf   :  { %v434_v34 = vld [vmem:[%s878_s0 + $0xe] ss:$16 sm:%s119_s16]   ;;  %75 = vrot.lane.b32.xlu0 %v74_v26, %s501_s11  ;;  %v117_v36 = vsel %vm41_vm0, %v433_v33, %v432_v31  ;;  %s195_s3 = smov 3  ;;  %s230_s8 = smov 192 }
  0x10   :  { %v435_v37 = vld [vmem:[%s878_s0 + $0xe] ss:$16 sm:%s124_s17]   ;;  %v122_v38 = vsel %vm46_vm1, %v434_v34, %v117_v36  ;;  %v455_v40 = vld [vmem:[%s878_s0 + $0xc] ss:$16 sm:%s220_s25]   ;;  %s198_s9 = smov 12  ;;  %s503_s10 = smov 80  }
  0x11   :  { %v442_v42 = vld [vmem:[%s878_s0 + $0x5] ss:$16 sm:%s155_s18]   ;;  %v127_v43 = vsel %vm51_vm2, %v435_v37, %v122_v38  ;;  %v223_v44 = vsel %vm41_vm0, %v455_v40, %v454_v39  ;;  %v456_v45 = vld [vmem:[%s878_s0 + $0xc] ss:$16 sm:%s225_s27]   ;;  %s203_s12 = smov 48  ;;  %s270_s17 = smov 3 }
  0x12   :  { %181 = vrot.lane.b32.xlu1 %v180_v35, %s503_s10  ;;  %128 = vrot.lane.b32.xlu2 %v127_v43, %s502_s26  ;;  %v450_v46 = vld [vmem:[%s878_s0 + $0x4] ss:$16 sm:%s195_s3]   ;;  %v158_v48 = vsel %vm51_vm2, %v442_v42, %v153_v41  ;;  %v228_v49 = vsel %vm46_vm1, %v456_v45, %v223_v44  ;;  %s134_s20 = smov 3  ;;  %s273_s21 = smov 12 }
  0x13   :  { %v451_v47 = vld [vmem:[%s878_s0 + $0x4] ss:$16 sm:%s198_s9]   ;;  %v457_v50 = vld [vmem:[%s878_s0 + $0xc] ss:$16 sm:%s230_s8]   ;;  %s208_s11 = smov 192  ;;  %s278_s29 = smov 48 }
  0x14   :  { %v452_v51 = vld [vmem:[%s878_s0 + $0x4] ss:$16 sm:%s203_s12]   ;;  %v201_v52 = vsel %vm41_vm0, %v451_v47, %v450_v46  ;;  %v465_v53 = vld [vmem:[%s878_s0 + $0xb] ss:$16 sm:%s270_s17]   ;;  %v233_v55 = vsel %vm51_vm2, %v457_v50, %v228_v49  ;;  %s248_s3 = smov 3  ;;  %s251_s4 = smov 12 }
  0x15   :  { %v466_v54 = vld [vmem:[%s878_s0 + $0xb] ss:$16 sm:%s273_s21]   ;;  %v437_v56 = vld [vmem:[%s878_s0 + $0x86] ss:$8 sm:%s134_s20]   ;;  %v206_v57 = vsel %vm46_vm1, %v452_v51, %v201_v52  ;;  %s283_s9 = smov 192  ;;  %s504_s12 = smov 64  }
  0x16   :  { %v453_v58 = vld [vmem:[%s878_s0 + $0x4] ss:$16 sm:%s208_s11]   ;;  %v276_v59 = vsel %vm41_vm0, %v466_v54, %v465_v53  ;;  %v467_v60 = vld [vmem:[%s878_s0 + $0xb] ss:$16 sm:%s278_s29]   ;;  %s323_s17 = smov 3  ;;  %s326_s18 = smov 12 }
  0x17   :  { %159 = vrot.lane.b32.xlu0 %v158_v48, %s503_s10  ;;  %v461_v61 = vld [vmem:[%s878_s0 + $0x3] ss:$16 sm:%s248_s3]   ;;  %v211_v63 = vsel %vm51_vm2, %v453_v58, %v206_v57  ;;  %v281_v0 = vsel %vm46_vm1, %v467_v60, %v276_v59  ;;  %s187_s21 = smov 3  ;;  %s261_s11 = smov 192 }
  0x18   :  { %v462_v62 = vld [vmem:[%s878_s0 + $0x3] ss:$16 sm:%s251_s4]   ;;  %v468_v1 = vld [vmem:[%s878_s0 + $0xb] ss:$16 sm:%s283_s9]   ;;  %s331_s29 = smov 48  ;;  %s301_s3 = smov 3 }
  0x19   :  { %v254_v3 = vsel %vm41_vm0, %v462_v62, %v461_v61  ;;  %v476_v4 = vld [vmem:[%s878_s0 + $0xa] ss:$16 sm:%s323_s17]   ;;  %v286_v6 = vsel %vm51_vm2, %v468_v1, %v281_v0  ;;  %v448_v7 = vld [vmem:[%s878_s0 + $0x85] ss:$8 sm:%s187_s21]   ;;  %s304_s4 = smov 12  ;;  %s336_s9 = smov 192 }
  0x1a   :  { %234 = vrot.lane.b32.xlu1 %v233_v55, %s504_s12  ;;  %136 = vrot.lane.b32.xlu2 %v437_v56, %s502_s26  ;;  %s256_s26 = smov 48  ;;  %v477_v5 = vld [vmem:[%s878_s0 + $0xa] ss:$16 sm:%s326_s18]   ;;  %s376_s17 = smov 3 }
  0x1b   :  { %v463_v2 = vld [vmem:[%s878_s0 + $0x3] ss:$16 sm:%s256_s26]   ;;  %v329_v10 = vsel %vm41_vm0, %v477_v5, %v476_v4  ;;  %v478_v11 = vld [vmem:[%s878_s0 + $0xa] ss:$16 sm:%s331_s29]   ;;  %s505_s26 = smov 48   ;;  %s379_s18 = smov 12 }
  0x1c   :  { %v259_v8 = vsel %vm46_vm1, %v463_v2, %v254_v3  ;;  %v464_v9 = vld [vmem:[%s878_s0 + $0x3] ss:$16 sm:%s261_s11]   ;;  %v472_v12 = vld [vmem:[%s878_s0 + $0x2] ss:$16 sm:%s301_s3]   ;;  %v334_v15 = vsel %vm46_vm1, %v478_v11, %v329_v10  ;;  %s240_s21 = smov 3  ;;  %s314_s11 = smov 192 }
  0x1d   :  { %v473_v13 = vld [vmem:[%s878_s0 + $0x2] ss:$16 sm:%s304_s4]   ;;  %v264_v14 = vsel %vm51_vm2, %v464_v9, %v259_v8  ;;  %v479_v16 = vld [vmem:[%s878_s0 + $0xa] ss:$16 sm:%s336_s9]   ;;  %s384_s29 = smov 48  ;;  %s354_s3 = smov 3 }
  0x1e   :  { %v307_v18 = vsel %vm41_vm0, %v473_v13, %v472_v12  ;;  %v487_v19 = vld [vmem:[%s878_s0 + $0x9] ss:$16 sm:%s376_s17]   ;;  %v339_v21 = vsel %vm51_vm2, %v479_v16, %v334_v15  ;;  %v459_v22 = vld [vmem:[%s878_s0 + $0x84] ss:$8 sm:%s240_s21]   ;;  %s357_s4 = smov 12  ;;  %s389_s9 = smov 192 }
  0x1f   :  { %212 = vrot.lane.b32.xlu0 %v211_v63, %s504_s12  ;;  %v488_v20 = vld [vmem:[%s878_s0 + $0x9] ss:$16 sm:%s379_s18]   ;;  %s362_s16 = smov 48  ;;  %s293_s19 = smov 3 }
  0x20   :  { %v475_v24 = vld [vmem:[%s878_s0 + $0x2] ss:$16 sm:%s314_s11]   ;;  %v382_v25 = vsel %vm41_vm0, %v488_v20, %v487_v19  ;;  %v489_v26 = vld [vmem:[%s878_s0 + $0x9] ss:$16 sm:%s384_s29]   ;;  %s367_s22 = smov 192  ;;  %s507_s27 = smov 16  }
  0x21   :  { %v483_v27 = vld [vmem:[%s878_s0 + $0x1] ss:$16 sm:%s354_s3]   ;;  %v387_v30 = vsel %vm46_vm1, %v489_v26, %v382_v25  ;;  %v490_v31 = vld [vmem:[%s878_s0 + $0x9] ss:$16 sm:%s389_s9]   ;;  %s399_s30 = smov 3  ;;  %s30_s21 = smov 3 }
  0x22   :  { %287 = vrot.lane.b32.xlu1 %v286_v6, %s505_s26  ;;  %189 = vrot.lane.b32.xlu2 %v448_v7, %s503_s10  ;;  %s309_s10 = smov 48  ;;  %v484_v28 = vld [vmem:[%s878_s0 + $0x1] ss:$16 sm:%s357_s4]   ;;  %v392_v34 = vsel %vm51_vm2, %v490_v31, %v387_v30 }
  0x23   :  { %v474_v17 = vld [vmem:[%s878_s0 + $0x2] ss:$16 sm:%s309_s10]   ;;  %s506_s10 = smov 32   ;;  %v360_v32 = vsel %vm41_vm0, %v484_v28, %v483_v27  ;;  %v485_v33 = vld [vmem:[%s878_s0 + $0x1] ss:$16 sm:%s362_s16]  }
  0x24   :  { %v312_v23 = vsel %vm46_vm1, %v474_v17, %v307_v18  ;;  %v470_v35 = vld [vmem:[%s878_s0 + $0x83] ss:$8 sm:%s293_s19]   ;;  %v365_v36 = vsel %vm46_vm1, %v485_v33, %v360_v32  ;;  %v486_v37 = vld [vmem:[%s878_s0 + $0x1] ss:$16 sm:%s367_s22]  }
  0x25   :  { %v317_v29 = vsel %vm51_vm2, %v475_v24, %v312_v23  ;;  %v370_v38 = vsel %vm51_vm2, %v486_v37, %v365_v36  ;;  %v492_v40 = vld [vmem:[%s878_s0 + $0x81] ss:$8 sm:%s399_s30]   ;;  %v2_v41 = vld [vmem:[%s878_s0] ss:$8 sm:$0xf]  }
  0x26   :  { %v3_v42 = vld [vmem:[%s878_s0] ss:$8 sm:$0xf0]  }
  0x27   :  { %265 = vrot.lane.b32.xlu0 %v264_v14, %s505_s26  ;;  %v5_v43 = vsel %vm4_vm3, %v3_v42, %v2_v41  ;;  %v409_v44 = vld [vmem:[%s878_s0 + $0x40] ss:$8 sm:$0xf]  }
  0x28   :  { %v410_v45 = vld [vmem:[%s878_s0 + $0x40] ss:$8 sm:$0xf0]   ;;  %7 = vst.msk [vmem:[%s879_s1] ss:$8 sm:$0x3] %vm6_vm4, %v5_v43  }
  0x29   :  { %406 = vst.msk [vmem:[%s879_s1 - $0xf] ss:$8 sm:$0xc] %vm6_vm4, %v5_v43   ;;  %v19_v46 = vsel %vm4_vm3, %v410_v45, %v409_v44  ;;  %v415_v47 = vld [vmem:[%s878_s0 + $0x80] ss:$8 sm:%s30_s21]  }
  0x2a   :  { %340 = vrot.lane.b32.xlu1 %v339_v21, %s506_s10  ;;  %242 = vrot.lane.b32.xlu2 %v459_v22, %s504_s12  ;;  %407 = vst.msk [vmem:[%s879_s1 - $0x1e] ss:$8 sm:$0x30] %vm6_vm4, %v5_v43  }
  0x2b   :  { %408 = vst.msk [vmem:[%s879_s1 - $0x2d] ss:$8 sm:$0xc0] %vm6_vm4, %v5_v43  }
  0x2c   :  { %411 = vst.msk [vmem:[%s879_s1 + $0x4] ss:$8 sm:$0x3] %vm6_vm4, %v19_v46  }
  0x2d   :  { %412 = vst.msk [vmem:[%s879_s1 - $0xb] ss:$8 sm:$0xc] %vm6_vm4, %v19_v46  }
  0x2e   :  { %413 = vst.msk [vmem:[%s879_s1 - $0x1a] ss:$8 sm:$0x30] %vm6_vm4, %v19_v46  }
  0x2f   :  { %318 = vrot.lane.b32.xlu0 %v317_v29, %s506_s10  ;;  %414 = vst.msk [vmem:[%s879_s1 - $0x29] ss:$8 sm:$0xc0] %vm6_vm4, %v19_v46  }
  0x30   :  { %416 = vst.msk [vmem:[%s879_s1 + $0x10] ss:$8 sm:$0x3] %vm6_vm4, %v415_v47  }
  0x32   :  { %393 = vrot.lane.b32.xlu1 %v392_v34, %s507_s27  ;;  %295 = vrot.lane.b32.xlu2 %v470_v35, %s505_s26  ;;  %s346_s26 = smov 3 }
  0x33   :  { %v481_v39 = vld [vmem:[%s878_s0 + $0x82] ss:$8 sm:%s346_s26]  }
  0x37   :  { %371 = vrot.lane.b32.xlu0 %v370_v38, %s507_s27 }
  0x3a   :  { %348 = vrot.lane.b32.xlu2 %v481_v39, %s506_s10 }
  0x42   :  { %401 = vrot.lane.b32.xlu2 %v492_v40, %s507_s27 }
  0x6c   :  { %v129_v48 = vpop.permute.xlu2 %128  }
  0x74   :  { %v84_v49 = vpop.permute.xlu1 %83   ;;  %v137_v50 = vpop.permute.xlu2 %136  }
  0x75   :  { %427 = vst.msk [vmem:[%s879_s1 + $0x10] ss:$8 sm:$0x3] %vm55_vm5, %v84_v49  }
  0x76   :  { %438 = vst.msk [vmem:[%s879_s1 + $0x10] ss:$8 sm:$0x3] %vm108_vm6, %v137_v50  }
  0x79   :  { %v54_v51 = vpop.permute.xlu0 %53  }
  0x7a   :  { %56 = vst.msk [vmem:[%s879_s1] sm:$0xff] %vm55_vm5, %v54_v51  }
  0x7c   :  { %v107_v52 = vpop.permute.xlu1 %106   ;;  %v190_v53 = vpop.permute.xlu2 %189  }
  0x7d   :  { %109 = vst.msk [vmem:[%s879_s1] sm:$0xff] %vm108_vm6, %v107_v52  }
  0x7e   :  { %449 = vst.msk [vmem:[%s879_s1 + $0x10] ss:$8 sm:$0x3] %vm161_vm7, %v190_v53  }
  0x81   :  { %v76_v54 = vpop.permute.xlu0 %75  }
  0x82   :  { %425 = vst.msk [vmem:[%s879_s1 + $0x8] sm:$0xff] %vm55_vm5, %v76_v54  }
  0x83   :  { %436 = vst.msk [vmem:[%s879_s1 + $0x8] sm:$0xff] %vm108_vm6, %v129_v48  }
  0x84   :  { %v182_v55 = vpop.permute.xlu1 %181   ;;  %v243_v56 = vpop.permute.xlu2 %242  }
  0x85   :  { %447 = vst.msk [vmem:[%s879_s1 + $0x8] sm:$0xff] %vm161_vm7, %v182_v55  }
  0x86   :  { %460 = vst.msk [vmem:[%s879_s1 + $0x10] ss:$8 sm:$0x3] %vm214_vm8, %v243_v56  }
  0x89   :  { %v160_v57 = vpop.permute.xlu0 %159  }
  0x8a   :  { %162 = vst.msk [vmem:[%s879_s1] sm:$0xff] %vm161_vm7, %v160_v57  }
  0x8c   :  { %v235_v58 = vpop.permute.xlu1 %234   ;;  %v296_v59 = vpop.permute.xlu2 %295  }
  0x8d   :  { %458 = vst.msk [vmem:[%s879_s1 + $0x8] sm:$0xff] %vm214_vm8, %v235_v58  }
  0x8e   :  { %471 = vst.msk [vmem:[%s879_s1 + $0x10] ss:$8 sm:$0x3] %vm267_vm9, %v296_v59  }
  0x91   :  { %v213_v60 = vpop.permute.xlu0 %212  }
  0x92   :  { %215 = vst.msk [vmem:[%s879_s1] sm:$0xff] %vm214_vm8, %v213_v60  }
  0x94   :  { %v288_v61 = vpop.permute.xlu1 %287   ;;  %v349_v62 = vpop.permute.xlu2 %348  }
  0x95   :  { %469 = vst.msk [vmem:[%s879_s1 + $0x8] sm:$0xff] %vm267_vm9, %v288_v61  }
  0x96   :  { %482 = vst.msk [vmem:[%s879_s1 + $0x10] ss:$8 sm:$0x3] %vm320_vm10, %v349_v62  }
  0x99   :  { %v266_v63 = vpop.permute.xlu0 %265  }
  0x9a   :  { %268 = vst.msk [vmem:[%s879_s1] sm:$0xff] %vm267_vm9, %v266_v63  }
  0x9c   :  { %v341_v0 = vpop.permute.xlu1 %340   ;;  %v402_v1 = vpop.permute.xlu2 %401  }
  0x9d   :  { %480 = vst.msk [vmem:[%s879_s1 + $0x8] sm:$0xff] %vm320_vm10, %v341_v0  }
  0x9e   :  { %493 = vst.msk [vmem:[%s879_s1 + $0x10] ss:$8 sm:$0x3] %vm373_vm11, %v402_v1  }
  0xa1   :  { %v319_v2 = vpop.permute.xlu0 %318  }
  0xa2   :  { %321 = vst.msk [vmem:[%s879_s1] sm:$0xff] %vm320_vm10, %v319_v2  }
  0xa4   :  { %v394_v3 = vpop.permute.xlu1 %393  }
  0xa5   :  { %491 = vst.msk [vmem:[%s879_s1 + $0x8] sm:$0xff] %vm373_vm11, %v394_v3  }
  0xa9   :  { %v372_v4 = vpop.permute.xlu0 %371  }
  0xaa   :  { %374 = vst.msk [vmem:[%s879_s1] sm:$0xff] %vm373_vm11, %v372_v4  }

// kernel: mobilenet_block_nhwc.1
= control target key start
LH: loop header
LB: loop body
LE: loop exit
PB: predicated region body
PF: predicated region fallthrough
CT: control target
= control target key end

     0   :  { %s1255_s24 = smov 0   ;;  %s1783_s0 = inlined_call_operand.vmem [shape: f32[2,16,256], index: 0, kind: input, shape index: {}]   ;;  %s1784_s1 = inlined_call_operand.vmem [shape: f32[9,256], index: 1, kind: input, shape index: {}]   ;;  %s1785_s2 = inlined_call_operand.vmem [shape: f32[1,256], index: 2, kind: input, shape index: {}]   ;;  %s1786_s3 = inlined_call_operand.vmem [shape: f32[1,256], index: 3, kind: input, shape index: {}]   ;;  %s1787_s4 = inlined_call_operand.vmem [shape: bf16[128,256], index: 4, kind: input, shape index: {}]   ;;  %s1788_s5 = inlined_call_operand.vmem [shape: f32[1,256], index: 5, kind: input, shape index: {}]   ;;  %s1789_s6 = inlined_call_operand.vmem [shape: f32[1,256], index: 6, kind: input, shape index: {}]   ;;  %s1790_s7 = inlined_call_operand.vmem [shape: f32[2,16,512], index: 7, kind: output, shape index: {}]  }
   0x1 LB: > { %s1094_s25 = sadd.s32 4294967295, %s1208_s24   ;;  %p1098_p0 = scmp.ge.s32.totalorder %s1208_s24, 1  ;;  %s1208_s24 = sphi %s1255_s24, %s17_s24  }
   0x2   : > { %p237_p1 = scmp.lt.s32.totalorder %s1208_s24, 3 }
   0x4   : > { %p238_p2 = pnand %p1098_p0, %p237_p1 }
   0x5   : > { %p269_p3 = scmp.lt.s32.totalorder (!%p238_p2), %s1094_s25, 1  ;;  %s1210_s30 = smov (!%p238_p2), 16  }
   0x6   : > { %241 = sbr.rel (%p238_p2) target bundleno = 534 (0x216), region = 48  ;;  %s1212_s12 = smov (!%p238_p2), 32  }
   0x7   : > { %s1213_s17 = smov (!%p238_p2), 112   ;;  %s1214_s18 = smov (!%p238_p2), 96  }
   0xb   : > { %s1792_s25 = smov (!%p269_p3, %s1094_s25), 1  ;;  %vm298_vm0 = vcmask 1040384   ;;  %v1272_v10 = vld [vmem:[%s1784_s1] sm:$0xff]  ;;  %v1277_v11 = vld [vmem:[%s1784_s1 + $0x8] sm:$0xff]  ;;  %v1211_v12 = vmov 0.0   ;;  %vm288_vm1 = vcmask 254976  }
   0xc   : > { %s1169_s26 = sshll.u32 %s1792_s25, 5  ;;  %286 = vst [vmem:[#allocation2 + $0x30] sm:$0x3] %v1211_v12  ;;  %v433_v13 = vperm.slane %v1272_v10, 1  ;;  %v482_v14 = vperm.slane %v1272_v10, 4  ;;  %v483_v15 = vperm.slane %v1277_v11, 4 }
   0xd   : > { %s273_s29 = scalar_lea.vmem %s1783_s0, %s1169_s26  ;;  %279 = vst [vmem:[#allocation2] sm:$0xff] %v1211_v12  ;;  %v552_v16 = vperm.slane %v1277_v11, 7  ;;  %v434_v17 = vperm.slane %v1277_v11, 1  ;;  %v551_v18 = vperm.slane %v1272_v10, 7  ;;  %v620_v19 = vperm.slane %v1272_v10, 2 }
   0xe   : > { %v292_v0 = vld [vmem:[%s273_s29 + $0x10] sm:$0xff]  ;;  %v290_v1 = vld [vmem:[%s273_s29] sm:$0xff]  ;;  %v293_v4 = vld [vmem:[%s273_s29 + $0x18] sm:$0xff]  ;;  %280 = vst [vmem:[#allocation2 + $0x8] sm:$0xff] %v1211_v12  ;;  %v669_v20 = vperm.slane %v1272_v10, 5  ;;  %v670_v21 = vperm.slane %v1277_v11, 5 }
   0xf   : > { %v301_v2 = vrot.slane %v292_v0, 7  ;;  %v299_v3 = vrot.slane %v290_v1, 7  ;;  %v291_v5 = vld [vmem:[%s273_s29 + $0x8] sm:$0xff]  ;;  %v303_v7 = vrot.slane %v293_v4, 7  ;;  %283 = vst [vmem:[#allocation2 + $0x18] sm:$0xff] %v1211_v12  ;;  %v621_v23 = vperm.slane %v1277_v11, 2 }
  0x10   : > { %v300_v8 = vrot.slane %v291_v5, 7  ;;  %287 = vst [vmem:[#allocation2 + $0x38] sm:$0x3] %v1211_v12  ;;  %v1200_v22 = vld [vmem:[%s1784_s1 + $0x18] ss:$0 sm:$0xff]  ;;  %vm339_vm2 = vcmask 1040512  }
  0x11   : > { %313 = vrot.lane.b32.xlu2 %v301_v2, %s1210_s30  ;;  %305 = vrot.lane.b32.xlu0 %v299_v3, %s1210_s30  ;;  %v302_v6 = vsel %vm298_vm0, %v299_v3, %v301_v2  ;;  %v1201_v24 = vld [vmem:[%s1784_s1 + $0x10] ss:$0 sm:$0xff]  ;;  %289 = vst.msk [vmem:[#allocation2 + $0x40] sm:$0x3] %vm288_vm1, %v1211_v12  ;;  %vm281_vm3 = vcmask 261120   ;;  %vm317_vm4 = vcmask 130048  }
  0x12   : > { %309 = vrot.lane.b32.xlu1 %v302_v6, %s1210_s30  ;;  %v304_v9 = vsel %vm298_vm0, %v300_v8, %v303_v7  ;;  %282 = vst.msk [vmem:[#allocation2 + $0x10] sm:$0xff] %vm281_vm3, %v1211_v12  ;;  %vm342_vm5 = vcmask 122880   ;;  %vm330_vm6 = vcmask 1047681   ;;  %vm335_vm7 = vcmask 1047680  }
  0x13   : > { %285 = vst.msk [vmem:[#allocation2 + $0x28] sm:$0xff] %vm281_vm3, %v1211_v12  ;;  %v1303_v32 = vperm.slane %v1277_v11, 3  ;;  %v367_v35 = vperm.slane %v1272_v10, 3  ;;  %vm333_vm8 = vcmask 130049   ;;  %v400_v37 = vperm.slane %v1272_v10, 6 }
  0x14   : > { %vm381_vm9 = vcmask 1046528   ;;  %v358_v45 = vperm.slane %v1277_v11, 0  ;;  %v357_v47 = vperm.slane %v1272_v10, 0  ;;  %vm414_vm10 = vcmask 1045504  }
  0x15   : > { %vm469_vm11 = vcmask 916480   ;;  %vm656_vm12 = vcmask 785408  }
  0x19   : > { %315 = vrot.lane.b32.xlu2 %v303_v7, %s1210_s30  ;;  %307 = vrot.lane.b32.xlu0 %v300_v8, %s1210_s30 }
  0x1a   : > { %311 = vrot.lane.b32.xlu1 %v304_v9, %s1210_s30 }
  0x21   : > { %437 = vrot.lane.b32.xlu2 %v433_v13, %s1210_s30  ;;  %486 = vrot.lane.b32.xlu0 %v482_v14, %s1210_s30 }
  0x22   : > { %488 = vrot.lane.b32.xlu1 %v483_v15, %s1210_s30 }
  0x29   : > { %557 = vrot.lane.b32.xlu2 %v552_v16, %s1210_s30  ;;  %439 = vrot.lane.b32.xlu0 %v434_v17, %s1210_s30 }
  0x2a   : > { %555 = vrot.lane.b32.xlu1 %v551_v18, %s1210_s30  ;;  %s1170_s30 = sshll.u32 %s1792_s25, 6 }
  0x2b   : > { %s1770_s10 = scalar_lea.vmem %s1790_s7, %s1170_s30 }
  0x31   : > { %624 = vrot.lane.b32.xlu2 %v620_v19, %s1212_s12  ;;  %673 = vrot.lane.b32.xlu0 %v669_v20, %s1212_s12 }
  0x32   : > { %675 = vrot.lane.b32.xlu1 %v670_v21, %s1212_s12 }
  0x39   : > { %744 = vrot.lane.b32.xlu2 %v1200_v22, %s1212_s12  ;;  %626 = vrot.lane.b32.xlu0 %v621_v23, %s1212_s12 }
  0x3a   : > { %742 = vrot.lane.b32.xlu1 %v1201_v24, %s1212_s12 }
  0x6b   : > { %v314_v25 = vpop.permute.xlu2 %313 }
  0x6c   : > { %340 = vst.msk [vmem:[#allocation2 + $0x30] sm:$0x1] %vm339_vm2, %v314_v25 }
  0x73   : > { %v316_v26 = vpop.permute.xlu2 %315  ;;  %v1300_v31 = vld [vmem:[#allocation2 + $0x30] sm:$0x3] }
  0x74   : > { %v320_v27 = vsel %vm317_vm4, %v314_v25, %v316_v26  ;;  %343 = vst.msk [vmem:[#allocation2 + $0x40] sm:$0x1] %vm342_vm5, %v316_v26  ;;  %v373_v36 = vmul.f32 %v367_v35, %v1300_v31  ;;  %v406_v14 = vmul.f32 %v400_v37, %v1300_v31 }
  0x75   : > { %341 = vst [vmem:[#allocation2 + $0x38] sm:$0x1] %v320_v27 }
  0x76   : > { %v388_v49 = vrot.slane %v373_v36, 1  ;;  %v421_v21 = vrot.slane %v406_v14, 2 }
  0x7b   : > { %v1298_v28 = vpop.permute.xlu2 %437 }
  0x7c   : > { %v1307_v34 = vld [vmem:[#allocation2 + $0x38] sm:$0x3] }
  0x7d   : > { %v374_v38 = vmul.f32 %v1303_v32, %v1307_v34 }
  0x7f   : > { %v390_v53 = vrot.slane %v374_v38, 1 }
  0x83   : > { %v306_v29 = vpop.permute.xlu0 %305  ;;  %v1305_v33 = vpop.permute.xlu2 %557 }
  0x84   : > { %331 = vst.msk [vmem:[#allocation2] sm:$0xfe] %vm330_vm6, %v306_v29  ;;  %v310_v30 = vpop.permute.xlu1 %309 }
  0x85   : > { %336 = vst.msk [vmem:[#allocation2 + $0x18] sm:$0xff] %vm335_vm7, %v310_v30 }
  0x8b   : > { %v1314_v39 = vld [vmem:[#allocation2] sm:$0xff]  ;;  %v308_v40 = vpop.permute.xlu0 %307  ;;  %v1341_v61 = vpop.permute.xlu2 %624 }
  0x8c   : > { %v1316_v41 = vld [vmem:[#allocation2 + $0x18] sm:$0xff]  ;;  %v318_v42 = vsel %vm317_vm4, %v306_v29, %v308_v40  ;;  %334 = vst.msk [vmem:[#allocation2 + $0x10] sm:$0xfe] %vm333_vm8, %v308_v40  ;;  %v312_v43 = vpop.permute.xlu1 %311  ;;  %v445_v44 = vmul.f32 %v1298_v28, %v1314_v39  ;;  %v369_v48 = vmul.f32 %v367_v35, %v1314_v39  ;;  %v402_v52 = vmul.f32 %v400_v37, %v1314_v39 }
  0x8d   : > { %332 = vst [vmem:[#allocation2 + $0x8] sm:$0xfe] %v318_v42  ;;  %v1323_v46 = vsel %vm317_vm4, %v310_v30, %v312_v43  ;;  %v371_v50 = vmul.f32 %v367_v35, %v1316_v41  ;;  %v404_v55 = vmul.f32 %v400_v37, %v1316_v41  ;;  %v361_v56 = vmul.f32 %v357_v47, %v1316_v41 }
  0x8e   : > { %457 = vrot.lane.b32.xlu0 %v445_v44, %s1213_s17  ;;  %v1331_v51 = vmul.f32 %v1303_v32, %v1323_v46  ;;  %338 = vst.msk [vmem:[#allocation2 + $0x28] sm:$0xff] %vm317_vm4, %v312_v43  ;;  %v382_v54 = vrot.slane %v369_v48, 1  ;;  %v415_v59 = vrot.slane %v402_v52, 2  ;;  %v362_v60 = vmul.f32 %v358_v45, %v1323_v46 }
  0x8f   : > { %v383_v57 = vrot.slane %v371_v50, 1  ;;  %v359_v62 = vmul.f32 %v357_v47, %v1314_v39  ;;  %v416_v63 = vrot.slane %v404_v55, 2  ;;  %v632_v8 = vmul.f32 %v1341_v61, %v1314_v39 }
  0x90   : > { %v386_v58 = vrot.slane %v1331_v51, 1  ;;  %v448_v10 = vmul.f32 %v1298_v28, %v1316_v41  ;;  %v635_v25 = vmul.f32 %v1341_v61, %v1316_v41  ;;  %v401_v30 = vperm.slane %v1277_v11, 6 }
  0x91   : > { %v384_v0 = vsel %vm381_vm9, %v382_v54, %v383_v57  ;;  %v389_v1 = vsel %vm381_vm9, %v383_v57, %v388_v49  ;;  %v417_v5 = vsel %vm414_vm10, %v415_v59, %v416_v63  ;;  %v422_v36 = vsel %vm414_vm10, %v416_v63, %v421_v21 }
  0x92   : > { %v391_v2 = vsel %vm381_vm9, %v386_v58, %v390_v53  ;;  %v396_v4 = vadd.f32 %v384_v0, %v359_v62  ;;  %v398_v6 = vadd.f32 %v389_v1, %v361_v56  ;;  %v405_v50 = vmul.f32 %v401_v30, %v1323_v46 }
  0x93   : > { %v1349_v3 = vpop.permute.xlu0 %486  ;;  %v1352_v7 = vadd.f32 %v391_v2, %v362_v60  ;;  %v1361_v12 = vld [vmem:[#allocation2 + $0x10] sm:$0xff]  ;;  %v407_v55 = vmul.f32 %v401_v30, %v1307_v34 }
  0x94   : > { %v1356_v9 = vpop.permute.xlu1 %488  ;;  %v1378_v19 = vld [vmem:[#allocation2 + $0x8] sm:$0xff]  ;;  %v1393_v35 = vadd.f32 %v417_v5, %v396_v4  ;;  %v494_v37 = vmul.f32 %v1349_v3, %v1314_v39  ;;  %v497_v42 = vmul.f32 %v1349_v3, %v1316_v41  ;;  %v419_v1 = vrot.slane %v405_v50, 2  ;;  %v1428_v4 = vpop.permute.xlu2 %744 }
  0x95   : > { %v370_v44 = vmul.f32 %v1303_v32, %v1378_v19  ;;  %v403_v54 = vmul.f32 %v401_v30, %v1378_v19  ;;  %v1426_v2 = vadd.f32 %v422_v36, %v398_v6  ;;  %v500_v51 = vmul.f32 %v1349_v3, %v1300_v31 }
  0x96   : > { %644 = vrot.lane.b32.xlu0 %v632_v8, %s1214_s18  ;;  %v512_v52 = vrot.slane %v494_v37, 1  ;;  %v513_v56 = vrot.slane %v497_v42, 1  ;;  %v360_v21 = vmul.f32 %v358_v45, %v1378_v19  ;;  %v1461_v45 = vld [vmem:[#allocation2 + $0x28] sm:$0xff] }
  0x97   : > { %v385_v59 = vrot.slane %v370_v44, 1 }
  0x98   : > { %v514_v6 = vsel %vm381_vm9, %v512_v52, %v513_v56 }
  0x99   : > { %v387_v0 = vsel %vm381_vm9, %v385_v59, %v386_v58 }
  0x9b   : > { %v1363_v13 = vpop.permute.xlu0 %439 }
  0x9c   : > { %v1369_v15 = vsel %vm317_vm4, %v1298_v28, %v1363_v13  ;;  %v447_v16 = vmul.f32 %v1363_v13, %v1361_v12  ;;  %v1373_v17 = vpop.permute.xlu1 %555 }
  0x9d   : > { %v559_v18 = vsel %vm317_vm4, %v1373_v17, %v1305_v33  ;;  %v446_v20 = vmul.f32 %v1369_v15, %v1378_v19  ;;  %v449_v50 = vmul.f32 %v1369_v15, %v1323_v46 }
  0x9e   : > { %461 = vrot.lane.b32.xlu2 %v447_v16, %s1213_s17  ;;  %463 = vrot.lane.b32.xlu0 %v448_v10, %s1213_s17  ;;  %v564_v22 = vmul.f32 %v559_v18, %v1378_v19  ;;  %v567_v23 = vmul.f32 %v559_v18, %v1323_v46  ;;  %v570_v24 = vmul.f32 %v559_v18, %v1307_v34  ;;  %v418_v16 = vrot.slane %v403_v54, 2 }
  0x9f   : > { %459 = vrot.lane.b32.xlu1 %v446_v20, %s1213_s17  ;;  %v423_v18 = vrot.slane %v407_v55, 2  ;;  %v496_v55 = vmul.f32 %v1356_v9, %v1361_v12 }
  0xa0   : > { %v584_v26 = vrot.slane %v564_v22, 2  ;;  %v585_v27 = vrot.slane %v567_v23, 2  ;;  %v592_v28 = vrot.slane %v570_v24, 2 }
  0xa1   : > { %v424_v30 = vsel %vm414_vm10, %v419_v1, %v423_v18 }
  0xa2   : > { %v1401_v40 = vsel %vm414_vm10, %v584_v26, %v585_v27  ;;  %v1412_v47 = vsel %vm414_vm10, %v585_v27, %v592_v28  ;;  %v420_v26 = vsel %vm414_vm10, %v418_v16, %v419_v1  ;;  %v521_v27 = vrot.slane %v500_v51, 1 }
  0xa3   : > { %v1390_v29 = vpop.permute.xlu0 %673  ;;  %v1459_v11 = vadd.f32 %v424_v30, %v1352_v7 }
  0xa4   : > { %v1398_v38 = vpop.permute.xlu1 %675  ;;  %v522_v7 = vsel %vm381_vm9, %v513_v56, %v521_v27  ;;  %v499_v56 = vmul.f32 %v1356_v9, %v1461_v45  ;;  %v681_v51 = vmul.f32 %v1390_v29, %v1314_v39 }
  0xa5   : > { %v677_v43 = vsel %vm281_vm3, %v1390_v29, %v1398_v38 }
  0xa6   : > { %650 = vrot.lane.b32.xlu0 %v635_v25, %s1214_s18  ;;  %v682_v48 = vmul.f32 %v677_v43, %v1378_v19  ;;  %v685_v49 = vmul.f32 %v677_v43, %v1323_v46  ;;  %v688_v53 = vmul.f32 %v677_v43, %v1307_v34  ;;  %v397_v25 = vadd.f32 %v387_v0, %v360_v21 }
  0xa7   : > { %v450_v43 = vmul.f32 %v1363_v13, %v1461_v45  ;;  %v519_v0 = vrot.slane %v499_v56, 1  ;;  %v699_v18 = vrot.slane %v681_v51, 1  ;;  %v565_v21 = vmul.f32 %v1305_v33, %v1361_v12 }
  0xa8   : > { %v702_v32 = vrot.slane %v682_v48, 1  ;;  %v703_v57 = vrot.slane %v685_v49, 1  ;;  %v710_v60 = vrot.slane %v688_v53, 1  ;;  %v1456_v37 = vadd.f32 %v420_v26, %v397_v25 }
  0xa9   : > { %v563_v48 = vmul.f32 %v1373_v17, %v1314_v39  ;;  %v566_v49 = vmul.f32 %v1373_v17, %v1316_v41  ;;  %v490_v53 = vsel %vm317_vm4, %v1349_v3, %v1356_v9  ;;  %v568_v25 = vmul.f32 %v1305_v33, %v1461_v45 }
  0xaa   : > { %v1421_v63 = vsel %vm381_vm9, %v702_v32, %v703_v57  ;;  %v1436_v14 = vsel %vm381_vm9, %v703_v57, %v710_v60  ;;  %v569_v32 = vmul.f32 %v1373_v17, %v1300_v31  ;;  %v495_v3 = vmul.f32 %v490_v53, %v1378_v19  ;;  %v1498_v60 = vld [vmem:[#allocation2 + $0x40] sm:$0x3] }
  0xab   : > { %v627_v62 = vpop.permute.xlu0 %626  ;;  %v581_v13 = vrot.slane %v563_v48, 2  ;;  %v582_v52 = vrot.slane %v566_v49, 2  ;;  %v498_v59 = vmul.f32 %v490_v53, %v1323_v46  ;;  %v502_v16 = vmul.f32 %v1356_v9, %v1498_v60 }
  0xac   : > { %v628_v5 = vsel %vm281_vm3, %v1341_v61, %v627_v62  ;;  %v634_v8 = vmul.f32 %v627_v62, %v1361_v12  ;;  %v1433_v10 = vpop.permute.xlu1 %742  ;;  %v637_v54 = vmul.f32 %v627_v62, %v1461_v45  ;;  %v518_v62 = vrot.slane %v496_v55, 1 }
  0xad   : > { %v746_v58 = vsel %vm281_vm3, %v1433_v10, %v1428_v4  ;;  %v633_v61 = vmul.f32 %v628_v5, %v1378_v19  ;;  %v583_v15 = vsel %vm414_vm10, %v581_v13, %v582_v52  ;;  %v636_v57 = vmul.f32 %v628_v5, %v1323_v46 }
  0xae   : > { %648 = vrot.lane.b32.xlu2 %v634_v8, %s1214_s18  ;;  %527 = vrot.lane.b32.xlu0 %v514_v6, %s1213_s17  ;;  %v751_v20 = vmul.f32 %v746_v58, %v1378_v19  ;;  %v754_v22 = vmul.f32 %v746_v58, %v1323_v46  ;;  %v757_v24 = vmul.f32 %v746_v58, %v1307_v34  ;;  %v590_v1 = vrot.slane %v569_v32, 2 }
  0xaf   : > { %646 = vrot.lane.b32.xlu1 %v633_v61, %s1214_s18  ;;  %v515_v17 = vrot.slane %v495_v3, 1  ;;  %v516_v8 = vrot.slane %v498_v59, 1  ;;  %v684_v19 = vmul.f32 %v1390_v29, %v1316_v41  ;;  %v520_v46 = vsel %vm381_vm9, %v518_v62, %v519_v0 }
  0xb0   : > { %v771_v23 = vrot.slane %v751_v20, 2  ;;  %v772_v28 = vrot.slane %v754_v22, 2  ;;  %v779_v36 = vrot.slane %v757_v24, 2  ;;  %v591_v5 = vsel %vm414_vm10, %v582_v52, %v590_v1 }
  0xb1   : > { %v517_v58 = vsel %vm381_vm9, %v515_v17, %v516_v8  ;;  %v501_v6 = vmul.f32 %v490_v53, %v1307_v34  ;;  %v525_v9 = vrot.slane %v502_v16, 1  ;;  %v700_v61 = vrot.slane %v684_v19, 1 }
  0xb2   : > { %v1464_v42 = vsel %vm414_vm10, %v771_v23, %v772_v28  ;;  %v1469_v44 = vsel %vm414_vm10, %v772_v28, %v779_v36  ;;  %v687_v22 = vmul.f32 %v1390_v29, %v1300_v31  ;;  %v587_v26 = vrot.slane %v565_v21, 2 }
  0xb3   : > { %v523_v20 = vrot.slane %v501_v6, 1  ;;  %v526_v23 = vsel %vm381_vm9, %v519_v0, %v525_v9  ;;  %v701_v24 = vsel %vm381_vm9, %v699_v18, %v700_v61  ;;  %v588_v27 = vrot.slane %v568_v25, 2  ;;  %v1185_v25 = vld [vmem:[%s1787_s4 + $0x74] sm:$0xf] }
  0xb4   : > { %v708_v28 = vrot.slane %v687_v22, 1  ;;  %v571_v29 = vmul.f32 %v1305_v33, %v1498_v60  ;;  %v750_v30 = vmul.f32 %v1433_v10, %v1314_v39  ;;  %v753_v36 = vmul.f32 %v1433_v10, %v1316_v41 }
  0xb5   : > { %v524_v34 = vsel %vm381_vm9, %v516_v8, %v523_v20  ;;  %v683_v39 = vmul.f32 %v1398_v38, %v1361_v12  ;;  %v686_v41 = vmul.f32 %v1398_v38, %v1461_v45  ;;  %v756_v13 = vmul.f32 %v1433_v10, %v1300_v31 }
  0xb6   : > { %533 = vrot.lane.b32.xlu0 %v522_v7, %s1213_s17  ;;  %467 = vrot.lane.b32.xlu2 %v450_v43, %s1213_s17  ;;  %v589_v43 = vsel %vm414_vm10, %v587_v26, %v588_v27  ;;  %v709_v48 = vsel %vm381_vm9, %v700_v61, %v708_v28  ;;  %v594_v49 = vrot.slane %v571_v29, 2  ;;  %v768_v7 = vrot.slane %v750_v30, 2  ;;  %v1163_v26 = vld [vmem:[%s1787_s4 + $0x78] sm:$0xf0]  ;;  %v1184_v28 = vld [vmem:[%s1787_s4 + $0x64] sm:$0xf0] }
  0xb7   : > { %465 = vrot.lane.b32.xlu1 %v449_v50, %s1213_s17  ;;  %v769_v33 = vrot.slane %v753_v36, 2  ;;  %v706_v53 = vrot.slane %v686_v41, 1  ;;  %v689_v55 = vmul.f32 %v1398_v38, %v1498_v60  ;;  %v755_v10 = vmul.f32 %v1428_v4, %v1461_v45  ;;  %v1183_v30 = vld [vmem:[%s1787_s4 + $0x64] sm:$0xf]  ;;  %v1155_v36 = vld [vmem:[%s1787_s4 + $0x68] sm:$0xf0] }
  0xb8   : > { %v595_v50 = vsel %vm414_vm10, %v588_v27, %v594_v49  ;;  %v758_v3 = vmul.f32 %v1428_v4, %v1498_v60  ;;  %v1153_v27 = vld [vmem:[%s1787_s4 + $0x60] sm:$0xf]  ;;  %v1166_v29 = vor.u32 %v1185_v25, %v1163_v26  ;;  %v1113_v25 = vld [vmem:[%s1787_s4 + $0x10] sm:$0xf]  ;;  %v1173_v26 = vld [vmem:[%s1787_s4 + $0x14] sm:$0xf] }
  0xb9   : > { %v770_v52 = vsel %vm414_vm10, %v768_v7, %v769_v33  ;;  %v712_v31 = vrot.slane %v689_v55, 1  ;;  %v1154_v49 = vor.u32 %v1184_v28, %v1153_v27  ;;  %v1158_v7 = vor.u32 %v1183_v30, %v1155_v36  ;;  %v1115_v27 = vld [vmem:[%s1787_s4 + $0x18] sm:$0xf0]  ;;  %v1105_v36 = vld [vmem:[%s1787_s4] sm:$0xf] }
  0xba   : > { %951 = vmatpush.bf16.msra.mxu1 %v1166_v29  ;;  %1009 = vmatpush.bf16.msra.mxu3 %v1166_v29  ;;  %v1118_v30 = vor.u32 %v1173_v26, %v1115_v27 }
  0xbb   : > { %v713_v38 = vsel %vm381_vm9, %v706_v53, %v712_v31  ;;  %v1145_v31 = vld [vmem:[%s1787_s4 + $0x50] sm:$0xf] }
  0xbe   : > { %654 = vrot.lane.b32.xlu2 %v637_v54, %s1214_s18  ;;  %596 = vrot.lane.b32.xlu0 %v583_v15, %s1213_s17  ;;  %v777_v54 = vrot.slane %v756_v13, 2 }
  0xbf   : > { %652 = vrot.lane.b32.xlu1 %v636_v57, %s1214_s18  ;;  %v775_v57 = vrot.slane %v755_v10, 2  ;;  %952 = vmatpush.bf16.msra.mxu1 %v1158_v7  ;;  %v1181_v10 = vld [vmem:[%s1787_s4 + $0x54] sm:$0xf] }
  0xc0   : > { %v778_v32 = vsel %vm414_vm10, %v769_v33, %v777_v54  ;;  %1010 = vmatpush.bf16.msra.mxu3 %v1158_v7  ;;  %v1107_v7 = vld [vmem:[%s1787_s4 + $0x8] sm:$0xf0] }
  0xc6   : > { %531 = vrot.lane.b32.xlu2 %v520_v46, %s1213_s17  ;;  %602 = vrot.lane.b32.xlu0 %v591_v5, %s1213_s17 }
  0xc7   : > { %529 = vrot.lane.b32.xlu1 %v517_v58, %s1213_s17 }
  0xce   : > { %537 = vrot.lane.b32.xlu2 %v526_v23, %s1213_s17  ;;  %714 = vrot.lane.b32.xlu0 %v701_v24, %s1214_s18  ;;  %v1161_v23 = vld [vmem:[%s1787_s4 + $0x70] sm:$0xf]  ;;  %v1186_v24 = vld [vmem:[%s1787_s4 + $0x74] sm:$0xf0] }
  0xcf   : > { %535 = vrot.lane.b32.xlu1 %v524_v34, %s1213_s17  ;;  %v1162_v34 = vor.u32 %v1186_v24, %v1161_v23 }
  0xd1   : > { %937 = vmatpush.bf16.msra.mxu0 %v1162_v34  ;;  %995 = vmatpush.bf16.msra.mxu2 %v1162_v34  ;;  %v1174_v34 = vld [vmem:[%s1787_s4 + $0x14] sm:$0xf0] }
  0xd2   : > { %v1114_v28 = vor.u32 %v1174_v34, %v1113_v25 }
  0xd5   : > { %938 = vmatpush.bf16.msra.mxu0 %v1154_v49  ;;  %996 = vmatpush.bf16.msra.mxu2 %v1154_v49  ;;  %v1171_v49 = vld [vmem:[%s1787_s4 + $0x4] sm:$0xf] }
  0xd6   : > { %600 = vrot.lane.b32.xlu2 %v589_v43, %s1213_s17  ;;  %720 = vrot.lane.b32.xlu0 %v709_v48, %s1214_s18 }
  0xd7   : > { %598 = vrot.lane.b32.xlu1 %v1401_v40, %s1213_s17  ;;  %v705_v40 = vrot.slane %v683_v39, 1 }
  0xd9   : > { %v707_v56 = vsel %vm381_vm9, %v705_v40, %v706_v53 }
  0xde   : > { %606 = vrot.lane.b32.xlu2 %v595_v50, %s1213_s17  ;;  %783 = vrot.lane.b32.xlu0 %v770_v52, %s1214_s18 }
  0xdf   : > { %604 = vrot.lane.b32.xlu1 %v1412_v47, %s1213_s17  ;;  %v752_v47 = vmul.f32 %v1428_v4, %v1361_v12  ;;  %v781_v12 = vrot.slane %v758_v3, 2  ;;  %v1137_v3 = vld [vmem:[%s1787_s4 + $0x40] sm:$0xf] }
  0xe1   : > { %v774_v15 = vrot.slane %v752_v47, 2  ;;  %v782_v45 = vsel %vm414_vm10, %v775_v57, %v781_v12  ;;  %v1182_v47 = vld [vmem:[%s1787_s4 + $0x54] sm:$0xf0] }
  0xe6   : > { %718 = vrot.lane.b32.xlu2 %v707_v56, %s1214_s18  ;;  %789 = vrot.lane.b32.xlu0 %v778_v32, %s1214_s18 }
  0xe7   : > { %716 = vrot.lane.b32.xlu1 %v1421_v63, %s1214_s18  ;;  %v776_v63 = vsel %vm414_vm10, %v774_v15, %v775_v57  ;;  %v1146_v15 = vor.u32 %v1182_v47, %v1145_v31  ;;  %v1147_v57 = vld [vmem:[%s1787_s4 + $0x58] sm:$0xf0] }
  0xe9   : > { %939 = vmatpush.bf16.msra.mxu0 %v1146_v15  ;;  %997 = vmatpush.bf16.msra.mxu2 %v1146_v15 }
  0xee   : > { %724 = vrot.lane.b32.xlu2 %v713_v38, %s1214_s18 }
  0xef   : > { %722 = vrot.lane.b32.xlu1 %v1436_v14, %s1214_s18 }
  0xf6   : > { %787 = vrot.lane.b32.xlu2 %v776_v63, %s1214_s18  ;;  %v1180_v63 = vld [vmem:[%s1787_s4 + $0x44] sm:$0xf0] }
  0xf7   : > { %785 = vrot.lane.b32.xlu1 %v1464_v42, %s1214_s18 }
  0xf8   : > { %v462_v59 = vpop.permute.xlu2 %461 }
  0xfe   : > { %793 = vrot.lane.b32.xlu2 %v782_v45, %s1214_s18  ;;  %v1150_v45 = vor.u32 %v1181_v10, %v1147_v57 }
  0xff   : > { %791 = vrot.lane.b32.xlu1 %v1469_v44, %s1214_s18 }
 0x100   : > { %v458_v14 = vpop.permute.xlu0 %457  ;;  %953 = vmatpush.bf16.msra.mxu1 %v1150_v45  ;;  %1011 = vmatpush.bf16.msra.mxu3 %v1150_v45 }
 0x108   : > { %v649_v62 = vpop.permute.xlu2 %648  ;;  %v645_v0 = vpop.permute.xlu0 %644 }
 0x110   : > { %v1579_v8 = vpop.permute.xlu2 %467  ;;  %v1581_v16 = vpop.permute.xlu0 %463 }
 0x111   : > { %v460_v4 = vpop.permute.xlu1 %459 }
 0x112   : > { %v470_v60 = vsel %vm469_vm11, %v458_v14, %v460_v4  ;;  %v471_v1 = vsel %vm469_vm11, %v460_v4, %v462_v59  ;;  %v1179_v14 = vld [vmem:[%s1787_s4 + $0x44] sm:$0xf]  ;;  %v1139_v59 = vld [vmem:[%s1787_s4 + $0x48] sm:$0xf0] }
 0x113   : > { %v478_v42 = vadd.f32 %v470_v60, %v1393_v35  ;;  %v479_v17 = vadd.f32 %v471_v1, %v1456_v37  ;;  %v1129_v60 = vld [vmem:[%s1787_s4 + $0x30] sm:$0xf]  ;;  %v1178_v1 = vld [vmem:[%s1787_s4 + $0x34] sm:$0xf0] }
 0x118   : > { %v1583_v44 = vpop.permute.xlu2 %654  ;;  %v1585_v51 = vpop.permute.xlu0 %650 }
 0x120   : > { %v532_v6 = vpop.permute.xlu2 %531  ;;  %v528_v35 = vpop.permute.xlu0 %527 }
 0x121   : > { %v647_v19 = vpop.permute.xlu1 %646 }
 0x122   : > { %v657_v46 = vsel %vm656_vm12, %v645_v0, %v647_v19  ;;  %v658_v5 = vsel %vm656_vm12, %v647_v19, %v649_v62  ;;  %v1138_v62 = vor.u32 %v1180_v63, %v1137_v3  ;;  %v1142_v0 = vor.u32 %v1179_v14, %v1139_v59  ;;  %v1131_v19 = vld [vmem:[%s1787_s4 + $0x38] sm:$0xf0] }
 0x124   : > { %940 = vmatpush.bf16.msra.mxu0 %v1138_v62  ;;  %998 = vmatpush.bf16.msra.mxu2 %v1138_v62 }
 0x125   : > { %954 = vmatpush.bf16.msra.mxu1 %v1142_v0  ;;  %1012 = vmatpush.bf16.msra.mxu3 %v1142_v0 }
 0x128   : > { %v1593_v37 = vpop.permute.xlu2 %537  ;;  %v1595_v18 = vpop.permute.xlu0 %533 }
 0x129   : > { %v1589_v58 = vpop.permute.xlu1 %465 }
 0x130   : > { %v601_v20 = vpop.permute.xlu2 %600  ;;  %v597_v21 = vpop.permute.xlu0 %596 }
 0x131   : > { %v1591_v9 = vpop.permute.xlu1 %652 }
 0x138   : > { %v1625_v33 = vpop.permute.xlu2 %606  ;;  %v1627_v50 = vpop.permute.xlu0 %602 }
 0x139   : > { %v530_v61 = vpop.permute.xlu1 %529 }
 0x13a   : > { %v539_v43 = vsel %vm469_vm11, %v528_v35, %v530_v61  ;;  %v540_v48 = vsel %vm469_vm11, %v530_v61, %v532_v6  ;;  %v1175_v35 = vld [vmem:[%s1787_s4 + $0x24] sm:$0xf]  ;;  %v1123_v61 = vld [vmem:[%s1787_s4 + $0x28] sm:$0xf0] }
 0x13b   : > { %v547_v39 = vadd.f32 %v539_v43, %v478_v42  ;;  %v548_v41 = vadd.f32 %v540_v48, %v479_v17  ;;  %v1177_v42 = vld [vmem:[%s1787_s4 + $0x34] sm:$0xf]  ;;  %v1130_v17 = vor.u32 %v1178_v1, %v1129_v60  ;;  %v1126_v24 = vor.u32 %v1175_v35, %v1123_v61  ;;  %v1172_v43 = vld [vmem:[%s1787_s4 + $0x4] sm:$0xf0] }
 0x13c   : > { %v1134_v6 = vor.u32 %v1177_v42, %v1131_v19  ;;  %v472_v48 = vsel %vm469_vm11, %v1581_v16, %v1589_v58 }
 0x13d   : > { %941 = vmatpush.bf16.msra.mxu0 %v1130_v17  ;;  %999 = vmatpush.bf16.msra.mxu2 %v1130_v17  ;;  %v480_v16 = vadd.f32 %v472_v48, %v1426_v2 }
 0x13e   : > { %955 = vmatpush.bf16.msra.mxu1 %v1134_v6  ;;  %1013 = vmatpush.bf16.msra.mxu3 %v1134_v6 }
 0x140   : > { %v1646_v38 = vpop.permute.xlu2 %718  ;;  %v715_v12 = vpop.permute.xlu0 %714 }
 0x141   : > { %v1597_v22 = vpop.permute.xlu1 %535 }
 0x142   : > { %956 = vmatpush.bf16.msra.mxu1 %v1126_v24  ;;  %1014 = vmatpush.bf16.msra.mxu3 %v1126_v24 }
 0x146   : > { %957 = vmatpush.bf16.msra.mxu1 %v1118_v30  ;;  %1015 = vmatpush.bf16.msra.mxu3 %v1118_v30 }
 0x148   : > { %v1689_v23 = vpop.permute.xlu0 %720 }
 0x149   : > { %v599_v13 = vpop.permute.xlu1 %598 }
 0x14a   : > { %v608_v52 = vsel %vm469_vm11, %v597_v21, %v599_v13  ;;  %v609_v40 = vsel %vm469_vm11, %v599_v13, %v601_v20  ;;  %v1687_v20 = vpop.permute.xlu2 %724  ;;  %v1106_v13 = vor.u32 %v1172_v43, %v1105_v36 }
 0x14b   : > { %v616_v53 = vadd.f32 %v608_v52, %v547_v39  ;;  %v617_v54 = vadd.f32 %v609_v40, %v548_v41  ;;  %v473_v39 = vsel %vm469_vm11, %v1589_v58, %v1579_v8  ;;  %v541_v41 = vsel %vm469_vm11, %v1595_v18, %v1597_v22  ;;  %v807_v18 = vld [vmem:[%s1785_s2] sm:$0x3] }
 0x14c   : > { %v542_v52 = vsel %vm469_vm11, %v1597_v22, %v1593_v37  ;;  %v1110_v40 = vor.u32 %v1171_v49, %v1107_v7  ;;  %v549_v2 = vadd.f32 %v541_v41, %v480_v16  ;;  %v817_v37 = vld [vmem:[%s1786_s3] sm:$0x3]  ;;  %v809_v15 = vperm.slane %v807_v18, 0 }
 0x14d   : > { %v1631_v55 = vadd.f32 %v657_v46, %v616_v53  ;;  %v1633_v56 = vadd.f32 %v658_v5, %v617_v54  ;;  %v1121_v46 = vld [vmem:[%s1787_s4 + $0x20] sm:$0xf]  ;;  %v1176_v5 = vld [vmem:[%s1787_s4 + $0x24] sm:$0xf0]  ;;  %v481_v53 = vadd.f32 %v473_v39, %v1459_v11  ;;  %v810_v57 = vperm.slane %v807_v18, 1 }
 0x14e   : > { %v1122_v21 = vor.u32 %v1176_v5, %v1121_v46  ;;  %958 = vmatpush.bf16.msra.mxu1 %v1110_v40  ;;  %1016 = vmatpush.bf16.msra.mxu3 %v1110_v40  ;;  %v819_v63 = vperm.slane %v817_v37, 0  ;;  %v849_v41 = vld [vmem:[%s1788_s5] sm:$0x3] }
 0x14f   : > { %v550_v22 = vadd.f32 %v542_v52, %v481_v53  ;;  %v966_v16 = vperm.slane %v849_v41, 0  ;;  %v967_v52 = vperm.slane %v849_v41, 1 }
 0x150   : > { %942 = vmatpush.bf16.msra.mxu0 %v1122_v21  ;;  %1000 = vmatpush.bf16.msra.mxu2 %v1122_v21  ;;  %v784_v31 = vpop.permute.xlu0 %783 }
 0x151   : > { %v1635_v32 = vpop.permute.xlu1 %604 }
 0x152   : > { %v788_v54 = vpop.permute.xlu2 %787  ;;  %v610_v11 = vsel %vm469_vm11, %v1627_v50, %v1635_v32  ;;  %v611_v47 = vsel %vm469_vm11, %v1635_v32, %v1625_v33 }
 0x153   : > { %v618_v14 = vadd.f32 %v610_v11, %v549_v2  ;;  %v619_v59 = vadd.f32 %v611_v47, %v550_v22 }
 0x154   : > { %943 = vmatpush.bf16.msra.mxu0 %v1114_v28  ;;  %1001 = vmatpush.bf16.msra.mxu2 %v1114_v28 }
 0x158   : > { %944 = vmatpush.bf16.msra.mxu0 %v1106_v13  ;;  %1002 = vmatpush.bf16.msra.mxu2 %v1106_v13  ;;  %v790_v5 = vpop.permute.xlu0 %789  ;;  %v850_v13 = vld [vmem:[%s1789_s6] sm:$0x3] }
 0x159   : > { %v717_v4 = vpop.permute.xlu1 %716  ;;  %v975_v40 = vperm.slane %v850_v13, 0  ;;  %v976_v53 = vperm.slane %v850_v13, 1 }
 0x15a   : > { %v726_v8 = vsel %vm656_vm12, %v715_v12, %v717_v4  ;;  %v727_v58 = vsel %vm656_vm12, %v717_v4, %v1646_v38  ;;  %v820_v12 = vperm.slane %v817_v37, 1  ;;  %v794_v46 = vpop.permute.xlu2 %793 }
 0x15b   : > { %v734_v10 = vadd.f32 %v726_v8, %v1631_v55  ;;  %v735_v38 = vadd.f32 %v727_v58, %v1633_v56  ;;  %v659_v55 = vsel %vm656_vm12, %v1585_v51, %v1591_v9  ;;  %v660_v56 = vsel %vm656_vm12, %v1591_v9, %v1583_v44 }
 0x15c   : > { %v667_v1 = vadd.f32 %v659_v55, %v618_v14  ;;  %v668_v42 = vadd.f32 %v660_v56, %v619_v59 }
 0x161   : > { %v723_v29 = vpop.permute.xlu1 %722 }
 0x162   : > { %v728_v4 = vsel %vm656_vm12, %v1689_v23, %v723_v29  ;;  %v729_v60 = vsel %vm656_vm12, %v723_v29, %v1687_v20 }
 0x163   : > { %v736_v6 = vadd.f32 %v728_v4, %v667_v1  ;;  %v737_v35 = vadd.f32 %v729_v60, %v668_v42 }
 0x169   : > { %v786_v3 = vpop.permute.xlu1 %785 }
 0x16a   : > { %v795_v45 = vsel %vm656_vm12, %v784_v31, %v786_v3  ;;  %v796_v50 = vsel %vm656_vm12, %v786_v3, %v788_v54 }
 0x16b   : > { %v803_v33 = vadd.f32 %v795_v45, %v734_v10  ;;  %v804_v32 = vadd.f32 %v796_v50, %v735_v38 }
 0x16d   : > { %v813_v62 = vmul.f32 %v809_v15, %v803_v33  ;;  %v814_v0 = vmul.f32 %v810_v57, %v804_v32 }
 0x16f   : > { %v823_v17 = vadd.f32 %v819_v63, %v813_v62  ;;  %v824_v19 = vadd.f32 %v820_v12, %v814_v0 }
 0x171   : > { %v827_v61 = vmax.f32 %v823_v17, 0.0  ;;  %v828_v51 = vmax.f32 %v824_v19, 0.0  ;;  %v792_v21 = vpop.permute.xlu1 %791 }
 0x172   : > { %v797_v24 = vsel %vm656_vm12, %v790_v5, %v792_v21  ;;  %v798_v44 = vsel %vm656_vm12, %v792_v21, %v794_v46 }
 0x173   : > { %v805_v9 = vadd.f32 %v797_v24, %v736_v6  ;;  %v806_v23 = vadd.f32 %v798_v44, %v737_v35  ;;  %v831_v25 = vpack.c.bf16 %v828_v51, %v827_v61 }
 0x175   : > { %v815_v34 = vmul.f32 %v809_v15, %v805_v9  ;;  %v816_v20 = vmul.f32 %v810_v57, %v806_v23  ;;  %v853_v36 = vunpack.c.l.b16 %v831_v25  ;;  %v991_v48 = vunpack.c.h.b16 %v831_v25 }
 0x177   : > { %v825_v26 = vadd.f32 %v819_v63, %v815_v34  ;;  %v826_v27 = vadd.f32 %v820_v12, %v816_v20 }
 0x179   : > { %v829_v28 = vmax.f32 %v825_v26, 0.0  ;;  %v830_v29 = vmax.f32 %v826_v27, 0.0 }
 0x17b   : > { %v832_v30 = vpack.c.bf16 %v830_v29, %v829_v28 }
 0x17d   : > { %v854_v43 = vunpack.c.l.b16 %v832_v30  ;;  %v992_v49 = vunpack.c.h.b16 %v832_v30 }
 0x17f   : > { %v855_v7 = vpack.c.b16 %v854_v43, %v853_v36  ;;  %v993_v39 = vpack.c.b16 %v992_v49, %v991_v48 }
 0x181   : > { %945 = vmatmul.bf16.vlgmr.msra.gmra.mxu0 %v855_v7  ;;  %959 = vmatmul.bf16.vlgmr.msra.gmra.mxu1 %v855_v7 }
 0x182   : > { %1003 = vmatmul.bf16.vlgmr.msra.gmra.mxu2 %v993_v39  ;;  %1017 = vmatmul.bf16.vlgmr.msra.gmra.mxu3 %v993_v39 }
 0x1fe   : > { %v946_v54 = vpop.f32.mrf.mxu0  ;;  %v960_v8 = vpop.f32.mrf.mxu1 }
 0x1ff   : > { %v970_v58 = vmul.f32 %v966_v16, %v946_v54  ;;  %v971_v18 = vmul.f32 %v967_v52, %v960_v8 }
 0x201   : > { %v979_v2 = vadd.f32 %v975_v40, %v970_v58  ;;  %v980_v31 = vadd.f32 %v976_v53, %v971_v18 }
 0x203   : > { %v983_v37 = vmax.f32 %v979_v2, 0.0  ;;  %v984_v22 = vmax.f32 %v980_v31, 0.0 }
 0x205   : > { %987 = vst [vmem:[%s1770_s10] sm:$0xff] %v983_v37  ;;  %v1004_v11 = vpop.f32.mrf.mxu2  ;;  %v1018_v47 = vpop.f32.mrf.mxu3 }
 0x206   : > { %988 = vst [vmem:[%s1770_s10 + $0x8] sm:$0xff] %v984_v22  ;;  %v1023_v10 = vmul.f32 %v1004_v11, %v966_v16  ;;  %v1024_v38 = vmul.f32 %v1018_v47, %v967_v52  ;;  %v948_v15 = vpop.f32.mrf.mxu0  ;;  %v962_v57 = vpop.f32.mrf.mxu1 }
 0x207   : > { %v972_v3 = vmul.f32 %v966_v16, %v948_v15  ;;  %v973_v63 = vmul.f32 %v967_v52, %v962_v57 }
 0x208   : > { %v1027_v12 = vadd.f32 %v1023_v10, %v975_v40  ;;  %v1028_v45 = vadd.f32 %v1024_v38, %v976_v53 }
 0x209   : > { %v981_v50 = vadd.f32 %v975_v40, %v972_v3  ;;  %v982_v14 = vadd.f32 %v976_v53, %v973_v63 }
 0x20a   : > { %v1031_v59 = vmax.f32 %v1027_v12, 0.0  ;;  %v1032_v33 = vmax.f32 %v1028_v45, 0.0 }
 0x20b   : > { %v985_v32 = vmax.f32 %v981_v50, 0.0  ;;  %v986_v62 = vmax.f32 %v982_v14, 0.0 }
 0x20c   : > { %1035 = vst [vmem:[%s1770_s10 + $0x10] sm:$0xff] %v1031_v59 }
 0x20d   : > { %1036 = vst [vmem:[%s1770_s10 + $0x18] sm:$0xff] %v1032_v33  ;;  %v1006_v0 = vpop.f32.mrf.mxu2  ;;  %v1020_v55 = vpop.f32.mrf.mxu3 }
 0x20e   : > { %989 = vst [vmem:[%s1770_s10 + $0x20] sm:$0xff] %v985_v32  ;;  %v1025_v56 = vmul.f32 %v1006_v0, %v966_v16  ;;  %v1026_v4 = vmul.f32 %v1020_v55, %v967_v52 }
 0x20f   : > { %990 = vst [vmem:[%s1770_s10 + $0x28] sm:$0xff] %v986_v62 }
 0x210   : > { %v1029_v60 = vadd.f32 %v1025_v56, %v975_v40  ;;  %v1030_v1 = vadd.f32 %v1026_v4, %v976_v53 }
 0x212   : > { %v1033_v42 = vmax.f32 %v1029_v60, 0.0  ;;  %v1034_v17 = vmax.f32 %v1030_v1, 0.0 }
 0x214   : > { %1037 = vst [vmem:[%s1770_s10 + $0x30] sm:$0xff] %v1033_v42 }
 0x215   : > { %1038 = vst [vmem:[%s1770_s10 + $0x38] sm:$0xff] %v1034_v17 }
 0x216 PF: > { %s17_s24 = sadd.s32 1, %s1208_s24  }
 0x217   : > { %p14_p4 = scmp.ge.s32.totalorder %s17_s24, 4  }
 0x219   :  { %16 = sbr.rel (!%p14_p4) target bundleno = 1 (0x1), region = 78 }

</bundles_post_ra>
